<compile_context>
chip_gen: v7x
topology: tpu7x:2x2x1
jax: 0.10.0
libtpu: 0.0.40
codegen_flags: <defaults>
</compile_context>

<pallas_src>
import functools

import jax
import jax.numpy as jnp
from jax.experimental import pallas as pl
from jax.experimental.pallas import tpu as pltpu

SCALE = 2  # scale_factor=2, mode='nearest'


def _cdiv(a, b):
    return -(-a // b)


def _round_up(a, b):
    return _cdiv(a, b) * b


def _upsample_kernel(x_ref, o_ref, *, w, k):
    # x_ref: (BR, k*W)  -- k consecutive input spatial rows per "super row".
    # o_ref: (BR, 4*k*W) -- for each W-wide segment j, lanes
    #        [4W*j, 4W*j + 2W) are output row 2i and [4W*j + 2W, 4W*(j+1))
    #        are output row 2i+1; both equal the width-duplicated segment.
    x = x_ref[...]
    pieces = []
    for j in range(k):  # static, small (k <= 8)
        seg = x[:, j * w:(j + 1) * w]                 # static lane slice
        segu = jnp.repeat(seg, SCALE, axis=-1)        # width duplication (2W)
        pieces.append(segu)                           # even output row
        pieces.append(segu)                           # odd output row (free H dup)
    # Single full-width, lane-dense store (no masked half-width stores).
    o_ref[...] = jnp.concatenate(pieces, axis=-1)


def _choose_fold(n_rows, w, max_k=8):
    """Fold k consecutive input rows per kernel super-row so the output
    block's lane dim 4*k*w is >= 128 (ideally a multiple of 128).  k must
    divide n_rows so the reshape is exact; k == 1 is always correct."""
    fallback = None
    for k in range(1, max(1, min(n_rows, max_k)) + 1):
        if n_rows % k:
            continue
        lanes = SCALE * SCALE * k * w
        if lanes % 128 == 0:
            return k                      # lane-aligned output store
        if lanes >= 128 and fallback is None:
            fallback = k
    return fallback if fallback is not None else 1


def _choose_row_block(m_rows, row_bytes, itemsize, budget_bytes=3 << 20):
    """Rows per block: a multiple of the sublane packing whose input tile
    stays under the byte budget.  No divisibility constraint on m_rows --
    Pallas masks the partial last block.  Prefer an even number of grid
    steps (>= 2) so a 2-TensorCore chip (v7x) can shard the grid."""
    pack = max(8, 32 // max(itemsize, 1))   # 8 f32 / 16 bf16 / 32 int8
    cap = max(pack, (budget_bytes // max(row_bytes, 1)) // pack * pack)
    if m_rows <= pack or m_rows < 2 * pack:
        return m_rows, 1                    # single exact block (full dim)
    if m_rows <= cap:
        br = min(cap, _round_up(_cdiv(m_rows, 2), pack))   # 2 steps
        return br, _cdiv(m_rows, br)
    br = cap
    steps = _cdiv(m_rows, br)
    if 2 < steps <= 9 and steps % 2 == 1:   # small odd grid -> even it out
        br = min(cap, max(pack, _round_up(_cdiv(m_rows, steps + 1), pack)))
    return br, _cdiv(m_rows, br)


def upsample_nearest_2x(x):
    """Nearest-neighbor 2x spatial upsample of an NCHW tensor via Pallas."""
    assert x.ndim == 4
    B, C, H, W = x.shape
    itemsize = x.dtype.itemsize
    N = B * C * H                               # total input spatial rows

    # Lane folding so the output store is >= 128 lanes wide.
    k = _choose_fold(N, W)
    M = N // k                                  # super rows
    in_row = k * W
    out_row = SCALE * SCALE * k * W

    # Free, contiguity-preserving reshape; output (M, 4kW) is bit-identical
    # (row-major) to (B, C, 2H, 2W).
    x2 = x.reshape(M, in_row)

    row_bytes = in_row * itemsize
    br, steps = _choose_row_block(M, row_bytes, itemsize)

    in_tile_bytes = br * row_bytes
    # VMEM: 2x double-buffered input + 2x double-buffered 4x output + widened
    # in-kernel intermediates (~6x) ~= 16x input tile; clamp to [32, 56] MiB
    # (fits v7x's 64 MiB VMEM, overrides v5e's 16 MiB default scoped limit).
    vmem_limit = int(min(56 << 20, max(32 << 20, 16 * in_tile_bytes + (4 << 20))))

    out2 = pl.pallas_call(
        functools.partial(_upsample_kernel, w=W, k=k),
        out_shape=jax.ShapeDtypeStruct((M, out_row), x.dtype),
        grid=(steps,),
        in_specs=[pl.BlockSpec((br, in_row), lambda g: (g, 0))],
        out_specs=pl.BlockSpec((br, out_row), lambda g: (g, 0)),
        compiler_params=pltpu.CompilerParams(
            dimension_semantics=("parallel",),
            vmem_limit_bytes=vmem_limit,
        ),
        cost_estimate=pl.CostEstimate(
            flops=0,
            transcendentals=0,
            bytes_accessed=(1 + SCALE * SCALE) * x.size * itemsize,
        ),
    )(x2)

    return out2.reshape(B, C, SCALE * H, SCALE * W)


if __name__ == "__main__":
    key = jax.random.PRNGKey(0)
    x = jax.random.normal(key, (2, 4, 16, 16), dtype=jnp.float32)

    out = jax.block_until_ready(upsample_nearest_2x(x))

    # Pure-JAX reference: repeat along H and W (nearest-neighbor 2x).
    ref = jnp.repeat(jnp.repeat(x, SCALE, axis=2), SCALE, axis=3)
    assert out.shape == (2, 4, 32, 32), out.shape
    assert out.dtype == x.dtype
    assert bool(jnp.array_equal(out, ref)), "mismatch vs reference"

    print("KERNEL_OK")
</pallas_src>

<mosaic_0001>
module attributes {stable_mosaic.version = 11 : i64} {
  func.func @_upsample_kernel(%arg0: i32, %arg1: memref<32x32xf32, #tpu.memory_space<vmem>>, %arg2: memref<32x128xf32, #tpu.memory_space<vmem>>) attributes {dimension_semantics = [#tpu.dimension_semantics<parallel>], iteration_bounds = array<i64: 2>, scalar_prefetch = 0 : i64, scratch_operands = 0 : i64, tpu.core_type = #tpu.core_type<tc>, window_params = [{transform_indices = @transform_0, window_bounds = array<i64: 32, 32>}, {transform_indices = @transform_1, window_bounds = array<i64: 32, 128>}]} {
    %c0 = arith.constant 0 : index
    %c0_0 = arith.constant 0 : index
    %0 = vector.load %arg1[%c0, %c0_0] : memref<32x32xf32, #tpu.memory_space<vmem>>, vector<32x32xf32>
    %1 = vector.extract_strided_slice %0 {offsets = [0, 0], sizes = [32, 16], strides = [1, 1]} : vector<32x32xf32> to vector<32x16xf32>
    %2 = vector.shape_cast %1 : vector<32x16xf32> to vector<32x16x1xf32>
    %3 = vector.broadcast %2 : vector<32x16x1xf32> to vector<32x16x2xf32>
    %4 = vector.shape_cast %3 : vector<32x16x2xf32> to vector<32x32xf32>
    %5 = vector.extract_strided_slice %0 {offsets = [0, 16], sizes = [32, 16], strides = [1, 1]} : vector<32x32xf32> to vector<32x16xf32>
    %6 = vector.shape_cast %5 : vector<32x16xf32> to vector<32x16x1xf32>
    %7 = vector.broadcast %6 : vector<32x16x1xf32> to vector<32x16x2xf32>
    %8 = vector.shape_cast %7 : vector<32x16x2xf32> to vector<32x32xf32>
    %9 = tpu.concatenate %4, %4, %8, %8 in 1 : vector<32x32xf32>, vector<32x32xf32>, vector<32x32xf32>, vector<32x32xf32> -> vector<32x128xf32>
    %c0_1 = arith.constant 0 : index
    %c0_2 = arith.constant 0 : index
    %10 = vector.load %arg2[%c0_1, %c0_2] : memref<32x128xf32, #tpu.memory_space<vmem>>, vector<32x128xf32>
    tpu.vector_store %arg2[%c0_1, %c0_2], %9 {strides = array<i32>} : memref<32x128xf32, #tpu.memory_space<vmem>>, vector<32x128xf32>,
    return
  }
  func.func @transform_0(%arg0: i32) -> (i32, i32) {
    %c0_i32 = arith.constant 0 : i32
    %c0_i32_0 = arith.constant 0 : i32
    return %arg0, %c0_i32 : i32, i32
  }
  func.func @transform_1(%arg0: i32) -> (i32, i32) {
    %c0_i32 = arith.constant 0 : i32
    %c0_i32_0 = arith.constant 0 : i32
    return %arg0, %c0_i32 : i32, i32
  }
}

</mosaic_0001>

<bundles_post_ra>
// kernel: tpu_custom_call.1
= control target key start
LH: loop header
LB: loop body
LE: loop exit
PB: predicated region body
PF: predicated region fallthrough
CT: control target
= control target key end

     0   :  { %6 = vsyncpa [#allocation3], 0  ;;  %s5796_s0 = inlined_call_operand.vmem [shape: f32[64,32], index: 0, kind: input, shape index: {}]   ;;  %s5797_s1 = inlined_call_operand.hbm [shape: f32[64,128], index: 1, kind: output, shape index: {}]  }
   0x1   :  { %8 = vsyncpa [#allocation3 + $0x1], 0  ;;  %s3829_s6 = smov 0   ;;  %s3831_s7 = smov 0  }
   0x2   :  { %s3833_s8 = smov 0   ;;  %s3835_s9 = smov 0  }
   0x3 LB: > { %s3850_s10 = sadd.s32 4294967295, %s3795_s9   ;;  %s3660_s11 = sadd.s32 4294967294, %s3795_s9   ;;  %s3795_s9 = sphi %s3835_s9, %s6154_s9   ;;  %s3791_s8 = sphi %s3833_s8, %s6153_s8   ;;  %s3787_s7 = sphi %s3831_s7, %s6152_s7   ;;  %s3783_s6 = sphi %s3829_s6, %s6151_s6  }
   0x4   : > { %s3854_s12 = sadd.s32 1, %s3795_s9   ;;  %s47_s13 = sadd.s32 1, %s3791_s8 }
   0x5   : > { %s44_s14 = ssub.s32 %s3795_s9, %s3854_s12  ;;  %p57_p0 = scmp.ne.s32.totalorder %s3791_s8, %s3787_s7 }
   0x6   : > { %p45_p1 = scmp.eq.s32.totalorder %s44_s14, 0  ;;  %p58_p2 = scmp.eq.s32.totalorder %s3850_s10, 1 }
   0x7   : > { %p63_p3 = scmp.ne.s32.totalorder %s3787_s7, %s3783_s6  ;;  %p64_p4 = scmp.eq.s32.totalorder %s3660_s11, 1 }
   0x8   : > { %s3865_s15 = scalar_select %p45_p1, %s3791_s8, %s47_s13  }
   0x9   : > { %p3867_p5 = por %p58_p2, %p57_p0  ;;  %p3871_p6 = por %p64_p4, %p63_p3 }
   0xa   : > { %p3663_p7 = scmp.ge.s32.totalorder %s3795_s9, 1  ;;  %p91_p8 = scmp.lt.s32.totalorder %s3795_s9, 3 }
   0xc   : > { %p92_p9 = pnand %p3663_p7, %p91_p8 }
   0xe   : > { %95 = sbr.rel (%p92_p9) target bundleno = 979 (0x3d3), region = 24 }
  0x15   : > { %s3665_s18 = sshll.u32 %s3850_s10, 2  ;;  %v122_v0 = vlaneseq  ;;  %v3797_v48 = vmov 1983009808   ;;  %s3799_s23 = smov 2   ;;  %vm1802_vm0 = vcmask 15360   ;;  %vm1807_vm1 = vcmask 31744  }
  0x16   : > { %p112_p10 = scmp.lt.s32.totalorder %s3665_s18, 7  ;;  %v477_v49 = vunpack.c.l.s4 %v3797_v48  ;;  %s3800_s24 = smov 4   ;;  %vm1812_vm2 = vcmask 48128   ;;  %vm1817_vm3 = vcmask 64512   ;;  %vm1822_vm4 = vcmask 80896  }
  0x17   : > { %v3878_v1 = vshrl.u32 %v122_v0, 7  ;;  %s3801_s25 = smov 6   ;;  %s3802_s26 = smov 8   ;;  %vm1827_vm5 = vcmask 97280   ;;  %vm1832_vm6 = vcmask 113664   ;;  %vm1837_vm7 = vcmask 130048  }
  0x18   : > { %s6156_s18 = smov (!%p112_p10, %s3665_s18), 7  ;;  %v478_v52 = vunpack.c.0.s8 %v477_v49  ;;  %s3803_s27 = smov 10   ;;  %vm1842_vm8 = vcmask 146432   ;;  %vm1847_vm9 = vcmask 162816   ;;  %vm1852_vm10 = vcmask 179200  }
  0x19   : > { %v135_v2 = vsub.s32 1, %v3878_v1  ;;  %v124_v3 = vsub.s32 0, %v3878_v1  ;;  %s3666_s19 = sshll.u32 %s6156_s18, 3  ;;  %v146_v7 = vsub.s32 2, %v3878_v1  ;;  %v157_v9 = vsub.s32 3, %v3878_v1  ;;  %s3804_s28 = smov 12  }
  0x1a   : > { %s3885_s22 = scalar_lea.vmem %s5796_s0, %s3666_s19  ;;  %v168_v10 = vsub.s32 4, %v3878_v1  ;;  %v179_v11 = vsub.s32 5, %v3878_v1  ;;  %v190_v12 = vsub.s32 6, %v3878_v1  ;;  %v201_v13 = vsub.s32 7, %v3878_v1  ;;  %s3805_s29 = smov 14  }
  0x1b   : > { %v118_v4 = vld [vmem:[%s3885_s22] sm:$0xff]  ;;  %v120_v8 = vld [vmem:[%s3885_s22 + $0x10] sm:$0xff]  ;;  %v121_v14 = vld [vmem:[%s3885_s22 + $0x18] sm:$0xff]  ;;  %v4038_v55 = vsub.s32 %v478_v52, %v3878_v1  ;;  %s3806_s30 = smov 16   ;;  %s3807_s2 = smov 18   ;;  %vm1857_vm11 = vcmask 195584  }
  0x1c   : > { %v3888_v5 = vrot.slane %v118_v4, %v135_v2  ;;  %v3890_v6 = vrot.slane %v118_v4, %v124_v3  ;;  %v3902_v15 = vrot.slane %v118_v4, %v146_v7  ;;  %v3904_v16 = vrot.slane %v120_v8, %v124_v3  ;;  %v119_v37 = vld [vmem:[%s3885_s22 + $0x8] sm:$0xff]  ;;  %s3808_s3 = smov 20   ;;  %s3809_s4 = smov 22  }
  0x1d   : > { %v3906_v17 = vrot.slane %v120_v8, %v135_v2  ;;  %v3908_v18 = vrot.slane %v120_v8, %v146_v7  ;;  %v3910_v19 = vrot.slane %v120_v8, %v157_v9  ;;  %v3912_v20 = vrot.slane %v120_v8, %v168_v10  ;;  %s3810_s5 = smov 24   ;;  %s3811_s11 = smov 26  }
  0x1e   : > { %5893 = vst [vmem:[#allocation5_spill] sm:$0xff] %v3888_v5  ;;  %5894 = vst [vmem:[#allocation6_spill] sm:$0xff] %v3890_v6  ;;  %138 = vbcast.lane.b32.xlu1 %v3888_v5, 256  ;;  %127 = vbcast.lane.b32.xlu0 %v3890_v6, 256  ;;  %v3914_v21 = vrot.slane %v120_v8, %v179_v11  ;;  %v3916_v22 = vrot.slane %v120_v8, %v190_v12  ;;  %s3812_s13 = smov 28   ;;  %s3813_s14 = smov 30  }
  0x1f   : > { %5895 = vst [vmem:[#allocation7_spill] sm:$0xff] %v3902_v15  ;;  %5896 = vst [vmem:[#allocation8_spill] sm:$0xff] %v3904_v16  ;;  %v3920_v23 = vrot.slane %v120_v8, %v201_v13  ;;  %v3922_v24 = vrot.slane %v121_v14, %v124_v3  ;;  %v3924_v25 = vrot.slane %v121_v14, %v135_v2  ;;  %vm1862_vm12 = vcmask 211968   ;;  %s3814_s18 = smov 32   ;;  %s3815_s19 = smov 64  }
  0x20   : > { %5897 = vst [vmem:[#allocation9_spill] sm:$0xff] %v3906_v17  ;;  %5898 = vst [vmem:[#allocation10_spill] sm:$0xff] %v3908_v18  ;;  %v3926_v26 = vrot.slane %v121_v14, %v146_v7  ;;  %v3928_v27 = vrot.slane %v121_v14, %v157_v9  ;;  %v3930_v28 = vrot.slane %v121_v14, %v168_v10  ;;  %vm1867_vm13 = vcmask 228352   ;;  %s3816_s20 = smov 96   ;;  %s108_s21 = sand.u32 1, %s3787_s7  }
  0x21   : > { %5899 = vst [vmem:[#allocation11_spill] sm:$0xff] %v3910_v19  ;;  %5900 = vst [vmem:[#allocation12_spill] sm:$0xff] %v3912_v20  ;;  %v3932_v29 = vrot.slane %v121_v14, %v179_v11  ;;  %v3934_v30 = vrot.slane %v121_v14, %v190_v12  ;;  %v3936_v31 = vrot.slane %v121_v14, %v201_v13  ;;  %vm1872_vm14 = vcmask 244736   ;;  %s3664_s22 = sshll.u32 %s108_s21, 5 }
  0x22   : > { %5901 = vst [vmem:[#allocation13_spill] sm:$0xff] %v3914_v21  ;;  %5902 = vst [vmem:[#allocation14_spill] sm:$0xff] %v3916_v22  ;;  %142 = vbcast.lane.b32.xlu1 %v3888_v5, 264  ;;  %131 = vbcast.lane.b32.xlu0 %v3890_v6, 264  ;;  %v3940_v32 = vrot.slane %v118_v4, %v157_v9  ;;  %v3944_v33 = vrot.slane %v118_v4, %v168_v10  ;;  %vm3565_vm15 = vcmask 261120  }
  0x23   : > { %5903 = vst [vmem:[#allocation15_spill] sm:$0xff] %v3920_v23  ;;  %5904 = vst [vmem:[#allocation16_spill] sm:$0xff] %v3922_v24  ;;  %v3948_v34 = vrot.slane %v118_v4, %v179_v11  ;;  %v3952_v35 = vrot.slane %v118_v4, %v190_v12  ;;  %v3956_v36 = vrot.slane %v118_v4, %v201_v13  ;;  %v3798_v4 = vmov 1934713408  }
  0x24   : > { %5905 = vst [vmem:[#allocation17_spill] sm:$0xff] %v3924_v25  ;;  %5906 = vst [vmem:[#allocation18_spill] sm:$0xff] %v3926_v26  ;;  %v3961_v38 = vrot.slane %v119_v37, %v124_v3  ;;  %v3964_v39 = vrot.slane %v119_v37, %v135_v2  ;;  %v3968_v40 = vrot.slane %v119_v37, %v146_v7  ;;  %v541_v7 = vunpack.c.l.s4 %v3798_v4 }
  0x25   : > { %5907 = vst [vmem:[#allocation19_spill] sm:$0xff] %v3928_v27  ;;  %5908 = vst [vmem:[#allocation20_spill] sm:$0xff] %v3930_v28  ;;  %v3972_v41 = vrot.slane %v119_v37, %v157_v9  ;;  %v3976_v42 = vrot.slane %v119_v37, %v168_v10  ;;  %v3980_v43 = vrot.slane %v119_v37, %v179_v11 }
  0x26   : > { %5909 = vst [vmem:[#allocation21_spill] sm:$0xff] %v3932_v29  ;;  %5910 = vst [vmem:[#allocation22_spill] sm:$0xff] %v3934_v30  ;;  %153 = vbcast.lane.b32.xlu1 %v3902_v15, 264  ;;  %149 = vbcast.lane.b32.xlu0 %v3902_v15, 256  ;;  %v3984_v44 = vrot.slane %v119_v37, %v190_v12  ;;  %v3988_v45 = vrot.slane %v119_v37, %v201_v13  ;;  %v542_v10 = vunpack.c.0.s8 %v541_v7 }
  0x27   : > { %5911 = vst [vmem:[#allocation23_spill] sm:$0xff] %v3936_v31  ;;  %5912 = vst [vmem:[#allocation24_spill] sm:$0xff] %v3940_v32 }
  0x28   : > { %5913 = vst [vmem:[#allocation25_spill] sm:$0xff] %v3944_v33  ;;  %5914 = vst [vmem:[#allocation26_spill] sm:$0xff] %v3948_v34  ;;  %v4072_v48 = vsub.s32 %v542_v10, %v3878_v1 }
  0x29   : > { %5915 = vst [vmem:[#allocation27_spill] sm:$0xff] %v3952_v35  ;;  %5916 = vst [vmem:[#allocation28_spill] sm:$0xff] %v3956_v36 }
  0x2a   : > { %164 = vbcast.lane.b32.xlu1 %v3940_v32, 264  ;;  %160 = vbcast.lane.b32.xlu0 %v3940_v32, 256  ;;  %5917 = vst [vmem:[#allocation29_spill] sm:$0xff] %v3961_v38  ;;  %5918 = vst [vmem:[#allocation30_spill] sm:$0xff] %v3964_v39 }
  0x2b   : > { %5919 = vst [vmem:[#allocation31_spill] sm:$0xff] %v3968_v40  ;;  %5920 = vst [vmem:[#allocation32_spill] sm:$0xff] %v3972_v41 }
  0x2c   : > { %5921 = vst [vmem:[#allocation33_spill] sm:$0xff] %v3976_v42  ;;  %5922 = vst [vmem:[#allocation34_spill] sm:$0xff] %v3980_v43 }
  0x2d   : > { %5923 = vst [vmem:[#allocation35_spill] sm:$0xff] %v3984_v44  ;;  %5924 = vst [vmem:[#allocation36_spill] sm:$0xff] %v3988_v45 }
  0x2e   : > { %175 = vbcast.lane.b32.xlu1 %v3944_v33, 264  ;;  %171 = vbcast.lane.b32.xlu0 %v3944_v33, 256 }
  0x32   : > { %186 = vbcast.lane.b32.xlu1 %v3948_v34, 264  ;;  %182 = vbcast.lane.b32.xlu0 %v3948_v34, 256 }
  0x36   : > { %197 = vbcast.lane.b32.xlu1 %v3952_v35, 264  ;;  %193 = vbcast.lane.b32.xlu0 %v3952_v35, 256 }
  0x3a   : > { %208 = vbcast.lane.b32.xlu1 %v3956_v36, 264  ;;  %204 = vbcast.lane.b32.xlu0 %v3956_v36, 256 }
  0x3e   : > { %215 = vbcast.lane.b32.xlu0 %v3961_v38, 256  ;;  %219 = vbcast.lane.b32.xlu1 %v3961_v38, 264 }
  0x42   : > { %226 = vbcast.lane.b32.xlu0 %v3964_v39, 256  ;;  %230 = vbcast.lane.b32.xlu1 %v3964_v39, 264 }
  0x46   : > { %237 = vbcast.lane.b32.xlu0 %v3968_v40, 256  ;;  %241 = vbcast.lane.b32.xlu1 %v3968_v40, 264 }
  0x4a   : > { %248 = vbcast.lane.b32.xlu0 %v3972_v41, 256  ;;  %252 = vbcast.lane.b32.xlu1 %v3972_v41, 264 }
  0x4e   : > { %259 = vbcast.lane.b32.xlu0 %v3976_v42, 256  ;;  %263 = vbcast.lane.b32.xlu1 %v3976_v42, 264 }
  0x52   : > { %270 = vbcast.lane.b32.xlu0 %v3980_v43, 256  ;;  %274 = vbcast.lane.b32.xlu1 %v3980_v43, 264 }
  0x56   : > { %281 = vbcast.lane.b32.xlu0 %v3984_v44, 256  ;;  %285 = vbcast.lane.b32.xlu1 %v3984_v44, 264 }
  0x5a   : > { %292 = vbcast.lane.b32.xlu0 %v3988_v45, 256  ;;  %296 = vbcast.lane.b32.xlu1 %v3988_v45, 264 }
  0x5e   : > { %303 = vbcast.lane.b32.xlu0 %v3904_v16, 256  ;;  %307 = vbcast.lane.b32.xlu1 %v3904_v16, 264 }
  0x62   : > { %314 = vbcast.lane.b32.xlu0 %v3906_v17, 256  ;;  %318 = vbcast.lane.b32.xlu1 %v3906_v17, 264 }
  0x66   : > { %325 = vbcast.lane.b32.xlu0 %v3908_v18, 256  ;;  %329 = vbcast.lane.b32.xlu1 %v3908_v18, 264 }
  0x6a   : > { %336 = vbcast.lane.b32.xlu0 %v3910_v19, 256  ;;  %340 = vbcast.lane.b32.xlu1 %v3910_v19, 264 }
  0x6e   : > { %347 = vbcast.lane.b32.xlu0 %v3912_v20, 256  ;;  %351 = vbcast.lane.b32.xlu1 %v3912_v20, 264 }
  0x72   : > { %358 = vbcast.lane.b32.xlu0 %v3914_v21, 256  ;;  %362 = vbcast.lane.b32.xlu1 %v3914_v21, 264 }
  0x76   : > { %369 = vbcast.lane.b32.xlu0 %v3916_v22, 256  ;;  %373 = vbcast.lane.b32.xlu1 %v3916_v22, 264 }
  0x7a   : > { %380 = vbcast.lane.b32.xlu0 %v3920_v23, 256  ;;  %384 = vbcast.lane.b32.xlu1 %v3920_v23, 264 }
  0x7e   : > { %391 = vbcast.lane.b32.xlu0 %v3922_v24, 256  ;;  %395 = vbcast.lane.b32.xlu1 %v3922_v24, 264 }
  0x82   : > { %402 = vbcast.lane.b32.xlu0 %v3924_v25, 256  ;;  %406 = vbcast.lane.b32.xlu1 %v3924_v25, 264 }
  0x86   : > { %413 = vbcast.lane.b32.xlu0 %v3926_v26, 256  ;;  %417 = vbcast.lane.b32.xlu1 %v3926_v26, 264 }
  0x8a   : > { %424 = vbcast.lane.b32.xlu0 %v3928_v27, 256  ;;  %428 = vbcast.lane.b32.xlu1 %v3928_v27, 264 }
  0x8e   : > { %435 = vbcast.lane.b32.xlu0 %v3930_v28, 256  ;;  %439 = vbcast.lane.b32.xlu1 %v3930_v28, 264 }
  0x90   : > { %v4019_v46 = vpop.permute.xlu1 %138  ;;  %v4021_v47 = vpop.permute.xlu0 %127 }
  0x92   : > { %446 = vbcast.lane.b32.xlu0 %v3932_v29, 256  ;;  %450 = vbcast.lane.b32.xlu1 %v3932_v29, 264 }
  0x94   : > { %v4025_v50 = vpop.permute.xlu1 %142  ;;  %v4027_v51 = vpop.permute.xlu0 %131 }
  0x96   : > { %457 = vbcast.lane.b32.xlu0 %v3934_v30, 256  ;;  %461 = vbcast.lane.b32.xlu1 %v3934_v30, 264 }
  0x98   : > { %v4031_v53 = vpop.permute.xlu1 %153  ;;  %v4033_v54 = vpop.permute.xlu0 %149 }
  0x99   : > { %v474_v56 = vcombine.low %v4021_v47, %v4033_v54 }
  0x9a   : > { %468 = vbcast.lane.b32.xlu0 %v3936_v31, 256  ;;  %472 = vbcast.lane.b32.xlu1 %v3936_v31, 264 }
  0x9b   : > { %v482_v61 = vrot.slane %v474_v56, %v4038_v55 }
  0x9c   : > { %v4042_v57 = vpop.permute.xlu1 %164  ;;  %v4044_v58 = vpop.permute.xlu0 %160 }
  0x9d   : > { %v490_v59 = vcombine.low %v4019_v46, %v4044_v58 }
  0x9f   : > { %v498_v60 = vrot.slane %v490_v59, %v4038_v55 }
  0xa0   : > { %v4050_v62 = vpop.permute.xlu1 %175  ;;  %v4052_v63 = vpop.permute.xlu0 %171 }
  0xa1   : > { %v539_v0 = vcombine.high %v482_v61, %v498_v60  ;;  %v538_v49 = vcombine.low %v482_v61, %v498_v60 }
  0xa3   : > { %v4082_v28 = vrot.slane %v538_v49, %v4072_v48  ;;  %v4088_v1 = vrot.slane %v539_v0, %v4072_v48 }
  0xa4   : > { %v4054_v2 = vpop.permute.xlu1 %186  ;;  %v4056_v3 = vpop.permute.xlu0 %182 }
  0xa5   : > { %5926 = vst [vmem:[#allocation38_spill] sm:$0xff] %v4082_v28 }
  0xa8   : > { %v4058_v8 = vpop.permute.xlu1 %197  ;;  %v4060_v9 = vpop.permute.xlu0 %193 }
  0xa9   : > { %v506_v11 = vcombine.low %v4052_v63, %v4060_v9 }
  0xab   : > { %v514_v52 = vrot.slane %v506_v11, %v4038_v55 }
  0xac   : > { %v4064_v12 = vpop.permute.xlu1 %208  ;;  %v4066_v13 = vpop.permute.xlu0 %204 }
  0xad   : > { %v522_v14 = vcombine.low %v4056_v3, %v4066_v13 }
  0xaf   : > { %v530_v37 = vrot.slane %v522_v14, %v4038_v55 }
  0xb0   : > { %v4075_v56 = vpop.permute.xlu0 %215  ;;  %v4077_v59 = vpop.permute.xlu1 %219 }
  0xb1   : > { %5925 = vst [vmem:[#allocation37_spill] sm:$0xff] %v4077_v59  ;;  %v570_v4 = vcombine.low %v514_v52, %v530_v37  ;;  %v571_v7 = vcombine.high %v514_v52, %v530_v37 }
  0xb3   : > { %v4085_v26 = vrot.slane %v570_v4, %v4072_v48  ;;  %v4091_v60 = vrot.slane %v571_v7, %v4072_v48 }
  0xb4   : > { %v4079_v30 = vpop.permute.xlu0 %226  ;;  %v4095_v10 = vpop.permute.xlu1 %230 }
  0xb5   : > { %5927 = vst [vmem:[#allocation39_spill] sm:$0xff] %v4085_v26  ;;  %v603_v61 = vcombine.high %v4082_v28, %v4085_v26  ;;  %5928 = vst [vmem:[#allocation40_spill] sm:$0xff] %v4095_v10 }
  0xb7   : > { %1566 = vrot.lane.b32.xlu0 %v603_v61, %s3799_s23 }
  0xb8   : > { %v4104_v0 = vpop.permute.xlu0 %237  ;;  %v4110_v4 = vpop.permute.xlu1 %241 }
  0xb9   : > { %v610_v49 = vcombine.low %v4075_v56, %v4104_v0 }
  0xbb   : > { %v618_v14 = vrot.slane %v610_v49, %v4038_v55 }
  0xbc   : > { %v4108_v52 = vpop.permute.xlu0 %248  ;;  %v4118_v61 = vpop.permute.xlu1 %252 }
  0xbd   : > { %v626_v7 = vcombine.low %v4079_v30, %v4108_v52  ;;  %5929 = vst [vmem:[#allocation41_spill] sm:$0xff] %v4118_v61 }
  0xbf   : > { %v634_v11 = vrot.slane %v626_v7, %v4038_v55 }
  0xc0   : > { %v4116_v37 = vpop.permute.xlu0 %259  ;;  %v4124_v22 = vpop.permute.xlu1 %263 }
  0xc1   : > { %v675_v26 = vcombine.high %v618_v14, %v634_v11  ;;  %5930 = vst [vmem:[#allocation42_spill] sm:$0xff] %v4124_v22  ;;  %v674_v31 = vcombine.low %v618_v14, %v634_v11 }
  0xc3   : > { %v4139_v19 = vrot.slane %v674_v31, %v4072_v48  ;;  %v4145_v16 = vrot.slane %v675_v26, %v4072_v48 }
  0xc4   : > { %v4120_v28 = vpop.permute.xlu0 %270  ;;  %v4132_v7 = vpop.permute.xlu1 %274 }
  0xc5   : > { %5931 = vst [vmem:[#allocation43_spill] sm:$0xff] %v4132_v7  ;;  %5932 = vst [vmem:[#allocation44_spill] sm:$0xff] %v4139_v19 }
  0xc8   : > { %v4122_v24 = vpop.permute.xlu0 %281 }
  0xc9   : > { %v642_v20 = vcombine.low %v4116_v37, %v4122_v24 }
  0xcb   : > { %v650_v29 = vrot.slane %v642_v20, %v4038_v55  ;;  %v4152_v20 = vpop.permute.xlu1 %285 }
  0xcc   : > { %v4128_v18 = vpop.permute.xlu0 %292  ;;  %5934 = vst [vmem:[#allocation46_spill] sm:$0xff] %v4152_v20 }
  0xcd   : > { %v658_v49 = vcombine.low %v4120_v28, %v4128_v18 }
  0xcf   : > { %v666_v27 = vrot.slane %v658_v49, %v4038_v55 }
  0xd0   : > { %v4136_v25 = vpop.permute.xlu0 %303 }
  0xd1   : > { %v706_v23 = vcombine.low %v650_v29, %v666_v27  ;;  %v707_v21 = vcombine.high %v650_v29, %v666_v27  ;;  %v4165_v29 = vpop.permute.xlu1 %296 }
  0xd2   : > { %5935 = vst [vmem:[#allocation47_spill] sm:$0xff] %v4165_v29 }
  0xd3   : > { %v4142_v17 = vrot.slane %v706_v23, %v4072_v48  ;;  %v4148_v45 = vrot.slane %v707_v21, %v4072_v48 }
  0xd4   : > { %v4150_v11 = vpop.permute.xlu0 %314 }
  0xd5   : > { %5933 = vst [vmem:[#allocation45_spill] sm:$0xff] %v4142_v17  ;;  %v739_v14 = vcombine.high %v4139_v19, %v4142_v17  ;;  %v4167_v44 = vpop.permute.xlu1 %307 }
  0xd7   : > { %1568 = vrot.lane.b32.xlu1 %v739_v14, %s3799_s23 }
  0xd8   : > { %v4163_v21 = vpop.permute.xlu0 %325 }
  0xd9   : > { %v4169_v42 = vpop.permute.xlu1 %318  ;;  %v746_v23 = vcombine.low %v4136_v25, %v4163_v21 }
  0xdb   : > { %v754_v40 = vrot.slane %v746_v23, %v4038_v55 }
  0xdc   : > { %v337_v31 = vpop.permute.xlu0 %336 }
  0xdd   : > { %v762_v27 = vcombine.low %v4150_v11, %v337_v31  ;;  %v4175_v19 = vpop.permute.xlu1 %329 }
  0xdf   : > { %v770_v26 = vrot.slane %v762_v27, %v4038_v55 }
  0xe0   : > { %v348_v49 = vpop.permute.xlu0 %347 }
  0xe1   : > { %v810_v38 = vcombine.low %v754_v40, %v770_v26  ;;  %v4182_v32 = vpop.permute.xlu1 %340 }
  0xe3   : > { %v4185_v15 = vrot.slane %v810_v38, %v4072_v48  ;;  %v763_v38 = vcombine.high %v4150_v11, %v337_v31 }
  0xe4   : > { %v359_v43 = vpop.permute.xlu0 %358 }
  0xe5   : > { %5936 = vst [vmem:[#allocation48_spill] sm:$0xff] %v4185_v15  ;;  %v4197_v7 = vpop.permute.xlu1 %351 }
  0xe8   : > { %v370_v41 = vpop.permute.xlu0 %369 }
  0xe9   : > { %v778_v14 = vcombine.low %v348_v49, %v370_v41 }
  0xeb   : > { %v786_v36 = vrot.slane %v778_v14, %v4038_v55  ;;  %v811_v14 = vcombine.high %v754_v40, %v770_v26 }
  0xec   : > { %v381_v17 = vpop.permute.xlu0 %380 }
  0xed   : > { %v794_v39 = vcombine.low %v359_v43, %v381_v17  ;;  %v825_v40 = vrot.slane %v811_v14, %v4072_v48 }
  0xef   : > { %v802_v35 = vrot.slane %v794_v39, %v4038_v55 }
  0xf0   : > { %v4180_v34 = vpop.permute.xlu0 %391 }
  0xf1   : > { %v842_v33 = vcombine.low %v786_v36, %v802_v35  ;;  %v843_v23 = vcombine.high %v786_v36, %v802_v35  ;;  %v491_v35 = vcombine.high %v4019_v46, %v4044_v58  ;;  %v507_v36 = vcombine.high %v4052_v63, %v4060_v9  ;;  %v4218_v58 = vpop.permute.xlu1 %362 }
  0xf3   : > { %v4188_v27 = vrot.slane %v842_v33, %v4072_v48  ;;  %v523_v33 = vcombine.high %v4056_v3, %v4066_v13  ;;  %v857_v29 = vrot.slane %v843_v23, %v4072_v48  ;;  %v475_v3 = vcombine.high %v4021_v47, %v4033_v54 }
  0xf4   : > { %v4190_v5 = vpop.permute.xlu0 %402  ;;  %v795_v23 = vcombine.high %v359_v43, %v381_v17  ;;  %v505_v63 = vrot.slane %v491_v35, %v4038_v55  ;;  %v521_v9 = vrot.slane %v507_v36, %v4038_v55  ;;  %v747_v17 = vcombine.high %v4136_v25, %v4163_v21 }
  0xf5   : > { %5937 = vst [vmem:[#allocation49_spill] sm:$0xff] %v4188_v27  ;;  %v875_v6 = vcombine.high %v4185_v15, %v4188_v27  ;;  %v537_v13 = vrot.slane %v523_v33, %v4038_v55  ;;  %v876_v46 = vcombine.low %v825_v40, %v857_v29  ;;  %v489_v27 = vrot.slane %v475_v3, %v4038_v55  ;;  %v4238_v11 = vpop.permute.xlu1 %373 }
  0xf6   : > { %v809_v43 = vrot.slane %v795_v23, %v4038_v55  ;;  %v4231_v33 = vrot.slane %v763_v38, %v4038_v55  ;;  %v4243_v25 = vrot.slane %v747_v17, %v4038_v55 }
  0xf7   : > { %1570 = vrot.lane.b32.xlu0 %v875_v6, %s3799_s23  ;;  %v5938_v6 = vcombine.low %v4088_v1, %v4091_v60  ;;  %v586_v47 = vcombine.low %v521_v9, %v537_v13  ;;  %v554_v54 = vcombine.low %v489_v27, %v505_v63  ;;  %v587_v20 = vcombine.high %v521_v9, %v537_v13 }
  0xf8   : > { %v4195_v39 = vpop.permute.xlu0 %413  ;;  %v826_v36 = vcombine.low %v4243_v25, %v4231_v33  ;;  %v555_v61 = vcombine.high %v489_v27, %v505_v63  ;;  %v1050_v27 = vcombine.low %v4050_v62, %v4058_v8  ;;  %v1066_v63 = vcombine.low %v4054_v2, %v4064_v12 }
  0xf9   : > { %v594_v38 = vrot.slane %v586_v47, %v4072_v48  ;;  %v882_v23 = vcombine.low %v4180_v34, %v4195_v39 }
  0xfa   : > { %v834_v17 = vrot.slane %v826_v36, %v4072_v48 }
  0xfb   : > { %1582 = vrot.lane.b32.xlu0 %v5938_v6, %s3800_s24  ;;  %v779_v6 = vcombine.high %v348_v49, %v370_v41  ;;  %v5939_v41 = vcombine.high %v4088_v1, %v4091_v60  ;;  %v877_v49 = vcombine.high %v825_v40, %v857_v29  ;;  %v562_v1 = vrot.slane %v554_v54, %v4072_v48  ;;  %v4257_v40 = vpop.permute.xlu1 %384 }
  0xfc   : > { %v4213_v26 = vpop.permute.xlu0 %424 }
  0xfd   : > { %v793_v35 = vrot.slane %v779_v6, %v4038_v55  ;;  %v898_v3 = vcombine.low %v4190_v5, %v4213_v26  ;;  %v607_v36 = vcombine.high %v562_v1, %v594_v38 }
  0xff   : > { %1586 = vrot.lane.b32.xlu0 %v876_v46, %s3800_s24  ;;  %v858_v21 = vcombine.low %v793_v35, %v809_v43  ;;  %v606_v46 = vcombine.low %v562_v1, %v594_v38  ;;  %v906_v6 = vrot.slane %v898_v3, %v4038_v55  ;;  %v4272_v10 = vpop.permute.xlu1 %395  ;;  %v569_v38 = vrot.slane %v555_v61, %v4072_v48 }
 0x100   : > { %v4224_v14 = vpop.permute.xlu0 %435  ;;  %v1034_v1 = vcombine.low %v4025_v50, %v4042_v57  ;;  %v643_v61 = vcombine.high %v4116_v37, %v4122_v24  ;;  %v5942_v37 = vcombine.low %v4145_v16, %v4148_v45 }
 0x101   : > { %v866_v29 = vrot.slane %v858_v21, %v4072_v48 }
 0x103   : > { %1598 = vrot.lane.b32.xlu0 %v5939_v41, %s3801_s25  ;;  %v890_v41 = vrot.slane %v882_v23, %v4038_v55  ;;  %v878_v21 = vcombine.low %v834_v17, %v866_v29  ;;  %v879_v13 = vcombine.high %v834_v17, %v866_v29  ;;  %v611_v17 = vcombine.high %v4075_v56, %v4104_v0 }
 0x104   : > { %v4240_v31 = vpop.permute.xlu0 %446  ;;  %v1290_v56 = vcombine.low %v4167_v44, %v4175_v19  ;;  %v1322_v0 = vcombine.low %v4197_v7, %v4238_v11 }
 0x105   : > { %v946_v15 = vcombine.low %v890_v41, %v906_v6 }
 0x107   : > { %1602 = vrot.lane.b32.xlu0 %v877_v49, %s3801_s25  ;;  %v4276_v23 = vrot.slane %v946_v15, %v4072_v48  ;;  %v4290_v15 = vpop.permute.xlu1 %406 }
 0x108   : > { %v4252_v60 = vpop.permute.xlu0 %457 }
 0x109   : > { %v914_v47 = vcombine.low %v4224_v14, %v4252_v60  ;;  %5940 = vst [vmem:[#allocation50_spill] sm:$0xff] %v4276_v23 }
 0x10b   : > { %1614 = vrot.lane.b32.xlu0 %v606_v46, %s3802_s26  ;;  %v922_v22 = vrot.slane %v914_v47, %v4038_v55  ;;  %v4282_v47 = vrot.slane %v587_v20, %v4072_v48  ;;  %v659_v20 = vcombine.high %v4120_v28, %v4128_v18 }
 0x10c   : > { %v4264_v54 = vpop.permute.xlu0 %468 }
 0x10d   : > { %v930_v49 = vcombine.low %v4240_v31, %v4264_v54  ;;  %v608_v29 = vcombine.low %v569_v38, %v4282_v47  ;;  %v4321_v24 = vrot.slane %v659_v20, %v4038_v55 }
 0x10f   : > { %v938_v3 = vrot.slane %v930_v49, %v4038_v55  ;;  %1618 = vrot.lane.b32.xlu0 %v878_v21, %s3802_s26  ;;  %v859_v49 = vcombine.high %v793_v35, %v809_v43  ;;  %v947_v43 = vcombine.high %v890_v41, %v906_v6  ;;  %v1018_v35 = vcombine.low %v4027_v51, %v4031_v53 }
 0x110   : > { %v4314_v6 = vrot.slane %v1066_v63, %v4038_v55  ;;  %v627_v41 = vcombine.high %v4079_v30, %v4108_v52  ;;  %v1306_v30 = vcombine.low %v4169_v42, %v4182_v32  ;;  %v1338_v52 = vcombine.low %v4218_v58, %v4257_v40 }
 0x111   : > { %v978_v46 = vcombine.low %v922_v22, %v938_v3  ;;  %v979_v21 = vcombine.high %v922_v22, %v938_v3  ;;  %v827_v22 = vcombine.high %v4243_v25, %v4231_v33  ;;  %v873_v18 = vrot.slane %v859_v49, %v4072_v48 }
 0x112   : > { %v4311_v25 = vrot.slane %v1050_v27, %v4038_v55  ;;  %v4341_v49 = vrot.slane %v643_v61, %v4038_v55  ;;  %v4346_v27 = vrot.slane %v1018_v35, %v4038_v55  ;;  %v4349_v63 = vrot.slane %v1034_v1, %v4038_v55 }
 0x113   : > { %1630 = vrot.lane.b32.xlu0 %v607_v36, %s3803_s27  ;;  %v4279_v59 = vrot.slane %v978_v46, %v4072_v48  ;;  %v993_v28 = vrot.slane %v979_v21, %v4072_v48  ;;  %v841_v3 = vrot.slane %v827_v22, %v4072_v48  ;;  %v961_v46 = vrot.slane %v947_v43, %v4072_v48  ;;  %v4338_v36 = vpop.permute.xlu1 %417 }
 0x114   : > { %v931_v21 = vcombine.high %v4240_v31, %v4264_v54  ;;  %v1114_v20 = vcombine.low %v4311_v25, %v4314_v6  ;;  %v4354_v22 = vrot.slane %v627_v41, %v4038_v55  ;;  %v722_v43 = vcombine.low %v4341_v49, %v4321_v24 }
 0x115   : > { %5941 = vst [vmem:[#allocation51_spill] sm:$0xff] %v4279_v59  ;;  %v1011_v9 = vcombine.high %v4276_v23, %v4279_v59  ;;  %v899_v31 = vcombine.high %v4190_v5, %v4213_v26  ;;  %v915_v54 = vcombine.high %v4224_v14, %v4252_v60  ;;  %v4365_v35 = vrot.slane %v1290_v56, %v4038_v55 }
 0x116   : > { %v4368_v1 = vrot.slane %v1306_v30, %v4038_v55  ;;  %v4374_v61 = vrot.slane %v1338_v52, %v4038_v55  ;;  %v4377_v5 = vrot.slane %v611_v17, %v4038_v55  ;;  %v883_v26 = vcombine.high %v4180_v34, %v4195_v39 }
 0x117   : > { %1634 = vrot.lane.b32.xlu0 %v879_v13, %s3803_s27  ;;  %1572 = vrot.lane.b32.xlu1 %v1011_v9, %s3799_s23  ;;  %v880_v13 = vcombine.low %v841_v3, %v873_v18  ;;  %v1012_v9 = vcombine.low %v961_v46, %v993_v28  ;;  %v4382_v14 = vrot.slane %v931_v21, %v4038_v55 }
 0x118   : > { %v609_v60 = vcombine.high %v569_v38, %v4282_v47  ;;  %v1082_v41 = vcombine.low %v4346_v27, %v4349_v63  ;;  %v690_v56 = vcombine.low %v4377_v5, %v4354_v22  ;;  %v4392_v30 = vrot.slane %v899_v31, %v4038_v55 }
 0x119   : > { %v4395_v17 = vrot.slane %v915_v54, %v4038_v55  ;;  %v5943_v34 = vcombine.high %v4145_v16, %v4148_v45  ;;  %v1354_v39 = vcombine.low %v4365_v35, %v4368_v1  ;;  %v1122_v38 = vrot.slane %v1114_v20, %v4072_v48 }
 0x11a   : > { %v4409_v52 = vrot.slane %v883_v26, %v4038_v55  ;;  %v1090_v16 = vrot.slane %v1082_v41, %v4072_v48  ;;  %v698_v20 = vrot.slane %v690_v56, %v4072_v48  ;;  %v1115_v56 = vcombine.high %v4311_v25, %v4314_v6 }
 0x11b   : > { %1646 = vrot.lane.b32.xlu0 %v608_v29, %s3804_s28  ;;  %1584 = vrot.lane.b32.xlu1 %v5942_v37, %s3800_s24  ;;  %v4371_v29 = vrot.slane %v1322_v0, %v4038_v55  ;;  %v4387_v37 = vpop.permute.xlu1 %428  ;;  %v730_v0 = vrot.slane %v722_v43, %v4072_v48  ;;  %v994_v21 = vcombine.low %v4395_v17, %v4382_v14 }
 0x11c   : > { %v962_v45 = vcombine.low %v4409_v52, %v4392_v30  ;;  %v1146_v31 = vcombine.low %v1090_v16, %v1122_v38  ;;  %v1362_v26 = vrot.slane %v1354_v39, %v4072_v48  ;;  %v1147_v39 = vcombine.high %v1090_v16, %v1122_v38  ;;  %v5950_v38 = vld [vmem:[#allocation43_spill] sm:$0xff] }
 0x11d   : > { %v1386_v47 = vcombine.low %v4371_v29, %v4374_v61  ;;  %v742_v54 = vcombine.low %v698_v20, %v730_v0  ;;  %v1067_v25 = vcombine.high %v4054_v2, %v4064_v12  ;;  %v5945_v12 = vld [vmem:[#allocation41_spill] sm:$0xff]  ;;  %v963_v16 = vcombine.high %v4409_v52, %v4392_v30 }
 0x11f   : > { %1650 = vrot.lane.b32.xlu0 %v880_v13, %s3804_s28  ;;  %1588 = vrot.lane.b32.xlu1 %v1012_v9, %s3800_s24  ;;  %v881_v13 = vcombine.high %v841_v3, %v873_v18  ;;  %v1013_v9 = vcombine.high %v961_v46, %v993_v28  ;;  %v4419_v43 = vpop.permute.xlu1 %439  ;;  %v1394_v18 = vrot.slane %v1386_v47, %v4072_v48 }
 0x120   : > { %v1002_v28 = vrot.slane %v994_v21, %v4072_v48  ;;  %v970_v3 = vrot.slane %v962_v45, %v4072_v48  ;;  %v743_v47 = vcombine.high %v698_v20, %v730_v0  ;;  %v1019_v21 = vcombine.high %v4027_v51, %v4031_v53 }
 0x121   : > { %v1418_v46 = vcombine.low %v1362_v26, %v1394_v18  ;;  %v691_v45 = vcombine.high %v4377_v5, %v4354_v22  ;;  %v1355_v51 = vcombine.high %v4365_v35, %v4368_v1  ;;  %v1387_v53 = vcombine.high %v4371_v29, %v4374_v61  ;;  %v5946_v22 = vld [vmem:[#allocation40_spill] sm:$0xff]  ;;  %v5947_v1 = vld [vmem:[#allocation46_spill] sm:$0xff]  ;;  %v5949_v61 = vld [vmem:[#allocation47_spill] sm:$0xff] }
 0x122   : > { %v1170_v35 = vcombine.low %v5946_v22, %v5945_v12  ;;  %v5948_v5 = vld [vmem:[#allocation42_spill] sm:$0xff]  ;;  %v1202_v0 = vcombine.low %v5950_v38, %v5949_v61  ;;  %v1035_v20 = vcombine.high %v4025_v50, %v4042_v57  ;;  %v4479_v30 = vrot.slane %v1067_v25, %v4038_v55 }
 0x123   : > { %1662 = vrot.lane.b32.xlu0 %v609_v60, %s3805_s29  ;;  %1600 = vrot.lane.b32.xlu1 %v5943_v34, %s3801_s25  ;;  %v1014_v60 = vcombine.low %v970_v3, %v1002_v28  ;;  %v4427_v41 = vpop.permute.xlu1 %450  ;;  %v723_v34 = vcombine.high %v4341_v49, %v4321_v24  ;;  %v1419_v24 = vcombine.high %v1362_v26, %v1394_v18 }
 0x124   : > { %v1015_v49 = vcombine.high %v970_v3, %v1002_v28  ;;  %v1186_v29 = vcombine.low %v5948_v5, %v5947_v1  ;;  %v1401_v26 = vrot.slane %v1387_v53, %v4072_v48  ;;  %v4492_v57 = vrot.slane %v1202_v0, %v4038_v55 }
 0x125   : > { %v4516_v25 = vrot.slane %v1019_v21, %v4038_v55 }
 0x126   : > { %v4489_v50 = vrot.slane %v1186_v29, %v4038_v55 }
 0x127   : > { %1666 = vrot.lane.b32.xlu0 %v881_v13, %s3805_s29  ;;  %1604 = vrot.lane.b32.xlu1 %v1013_v9, %s3801_s25  ;;  %v1083_v13 = vcombine.high %v4346_v27, %v4349_v63  ;;  %v1051_v9 = vcombine.high %v4050_v62, %v4058_v8  ;;  %v4451_v6 = vpop.permute.xlu1 %461  ;;  %v1129_v62 = vrot.slane %v1115_v56, %v4072_v48  ;;  %v5944_v63 = vld [vmem:[#allocation37_spill] sm:$0xff] }
 0x128   : > { %v995_v8 = vcombine.high %v4395_v17, %v4382_v14  ;;  %v737_v27 = vrot.slane %v723_v34, %v4072_v48  ;;  %v1154_v2 = vcombine.low %v5944_v63, %v4110_v4  ;;  %v705_v17 = vrot.slane %v691_v45, %v4072_v48 }
 0x129   : > { %v1097_v14 = vrot.slane %v1083_v13, %v4072_v48  ;;  %v1291_v56 = vcombine.high %v4167_v44, %v4175_v19  ;;  %v1307_v34 = vcombine.high %v4169_v42, %v4182_v32  ;;  %v1339_v13 = vcombine.high %v4218_v58, %v4257_v40 }
 0x12a   : > { %v744_v18 = vcombine.low %v705_v17, %v737_v27  ;;  %v1009_v28 = vrot.slane %v995_v8, %v4072_v48  ;;  %v4483_v3 = vrot.slane %v1154_v2, %v4038_v55  ;;  %v1442_v32 = vcombine.low %v4290_v15, %v4387_v37 }
 0x12b   : > { %1678 = vrot.lane.b32.xlu0 %v1146_v31, %s3806_s30  ;;  %1616 = vrot.lane.b32.xlu1 %v742_v54, %s3802_s26  ;;  %v4474_v31 = vrot.slane %v1051_v9, %v4038_v55  ;;  %v1369_v54 = vrot.slane %v1355_v51, %v4072_v48  ;;  %v1148_v52 = vcombine.low %v1097_v14, %v1129_v62 }
 0x12c   : > { %v1426_v9 = vcombine.low %v4272_v10, %v4338_v36  ;;  %v1458_v42 = vcombine.low %v4419_v43, %v4451_v6  ;;  %v1250_v51 = vcombine.low %v4489_v50, %v4492_v57  ;;  %v745_v53 = vcombine.high %v705_v17, %v737_v27 }
 0x12d   : > { %v1420_v19 = vcombine.low %v1369_v54, %v1401_v26  ;;  %v1130_v58 = vcombine.low %v4474_v31, %v4479_v30  ;;  %v4530_v21 = vrot.slane %v1291_v56, %v4038_v55  ;;  %v1321_v8 = vrot.slane %v1307_v34, %v4038_v55 }
 0x12e   : > { %v1450_v2 = vrot.slane %v1442_v32, %v4038_v55  ;;  %v1421_v56 = vcombine.high %v1369_v54, %v1401_v26 }
 0x12f   : > { %1682 = vrot.lane.b32.xlu0 %v1418_v46, %s3806_s30  ;;  %1620 = vrot.lane.b32.xlu1 %v1014_v60, %s3802_s26  ;;  %v4486_v46 = vrot.slane %v1170_v35, %v4038_v55  ;;  %v4494_v60 = vpop.permute.xlu1 %472  ;;  %v1466_v35 = vrot.slane %v1458_v42, %v4038_v55  ;;  %v1138_v0 = vrot.slane %v1130_v58, %v4072_v48 }
 0x130   : > { %v1474_v44 = vcombine.low %v4427_v41, %v4494_v60 }
 0x131   : > { %v1218_v40 = vcombine.low %v4483_v3, %v4486_v46 }
 0x132   : > { %v1482_v29 = vrot.slane %v1474_v44, %v4038_v55 }
 0x133   : > { %1694 = vrot.lane.b32.xlu0 %v1147_v39, %s3807_s2  ;;  %1632 = vrot.lane.b32.xlu1 %v743_v47, %s3803_s27  ;;  %v977_v39 = vrot.slane %v963_v16, %v4072_v48  ;;  %v1323_v47 = vcombine.high %v4197_v7, %v4238_v11  ;;  %v4519_v7 = vrot.slane %v1035_v20, %v4038_v55 }
 0x134   : > { %v1149_v11 = vcombine.high %v1097_v14, %v1129_v62  ;;  %v1353_v62 = vrot.slane %v1339_v13, %v4038_v55  ;;  %v1370_v16 = vcombine.low %v4530_v21, %v1321_v8  ;;  %v1226_v17 = vrot.slane %v1218_v40, %v4072_v48 }
 0x135   : > { %v1016_v45 = vcombine.low %v977_v39, %v1009_v28  ;;  %v1098_v27 = vcombine.low %v4516_v25, %v4519_v7  ;;  %v1258_v20 = vrot.slane %v1250_v51, %v4072_v48  ;;  %v1017_v34 = vcombine.high %v977_v39, %v1009_v28 }
 0x136   : > { %v1131_v28 = vcombine.high %v4474_v31, %v4479_v30  ;;  %v1219_v39 = vcombine.high %v4483_v3, %v4486_v46  ;;  %v1099_v40 = vcombine.high %v4516_v25, %v4519_v7  ;;  %v1371_v30 = vcombine.high %v4530_v21, %v1321_v8 }
 0x137   : > { %1698 = vrot.lane.b32.xlu0 %v1419_v24, %s3807_s2  ;;  %1636 = vrot.lane.b32.xlu1 %v1015_v49, %s3803_s27  ;;  %v1337_v24 = vrot.slane %v1323_v47, %v4038_v55  ;;  %v4536_v49 = vrot.slane %v1426_v9, %v4038_v55  ;;  %v1106_v47 = vrot.slane %v1098_v27, %v4072_v48 }
 0x138   : > { %v1282_v9 = vcombine.low %v1226_v17, %v1258_v20  ;;  %v1145_v31 = vrot.slane %v1131_v28, %v4072_v48  ;;  %v1233_v3 = vrot.slane %v1219_v39, %v4072_v48  ;;  %v1155_v25 = vcombine.high %v5944_v63, %v4110_v4 }
 0x139   : > { %v1402_v14 = vcombine.low %v1337_v24, %v1353_v62  ;;  %v1150_v13 = vcombine.low %v1106_v47, %v1138_v0  ;;  %v1151_v58 = vcombine.high %v1106_v47, %v1138_v0  ;;  %v1403_v51 = vcombine.high %v1337_v24, %v1353_v62 }
 0x13a   : > { %v1171_v7 = vcombine.high %v5946_v22, %v5945_v12  ;;  %v1113_v21 = vrot.slane %v1099_v40, %v4072_v48  ;;  %v1187_v8 = vcombine.high %v5948_v5, %v5947_v1  ;;  %v1203_v24 = vcombine.high %v5950_v38, %v5949_v61 }
 0x13b   : > { %1710 = vrot.lane.b32.xlu0 %v1148_v52, %s3808_s3  ;;  %1648 = vrot.lane.b32.xlu1 %v744_v18, %s3804_s28  ;;  %v1490_v52 = vcombine.low %v4536_v49, %v1450_v2  ;;  %v1522_v18 = vcombine.low %v1466_v35, %v1482_v29  ;;  %v1410_v32 = vrot.slane %v1402_v14, %v4072_v48 }
 0x13c   : > { %v1385_v62 = vrot.slane %v1371_v30, %v4072_v48  ;;  %v1152_v4 = vcombine.low %v1113_v21, %v1145_v31  ;;  %v1201_v1 = vrot.slane %v1187_v8, %v4038_v55  ;;  %v1217_v5 = vrot.slane %v1203_v24, %v4038_v55  ;;  %v5963_v24 = vld [vmem:[#allocation26_spill] sm:$0xff] }
 0x13d   : > { %v1498_v42 = vrot.slane %v1490_v52, %v4072_v48  ;;  %v1530_v44 = vrot.slane %v1522_v18, %v4072_v48  ;;  %v1427_v61 = vcombine.high %v4272_v10, %v4338_v36  ;;  %v1459_v0 = vcombine.high %v4419_v43, %v4451_v6 }
 0x13e   : > { %v1153_v52 = vcombine.high %v1113_v21, %v1145_v31  ;;  %v1267_v39 = vcombine.high %v1201_v1, %v1217_v5 }
 0x13f   : > { %1714 = vrot.lane.b32.xlu0 %v1420_v19, %s3808_s3  ;;  %1652 = vrot.lane.b32.xlu1 %v1016_v45, %s3804_s28  ;;  %v1378_v19 = vrot.slane %v1370_v16, %v4072_v48  ;;  %v1554_v26 = vcombine.low %v1498_v42, %v1530_v44  ;;  %v1251_v45 = vcombine.high %v4489_v50, %v4492_v57 }
 0x140   : > { %v1491_v50 = vcombine.high %v4536_v49, %v1450_v2  ;;  %v1523_v57 = vcombine.high %v1466_v35, %v1482_v29  ;;  %v1555_v27 = vcombine.high %v1498_v42, %v1530_v44  ;;  %v1417_v49 = vrot.slane %v1403_v51, %v4072_v48  ;;  %v5953_v42 = vld [vmem:[#allocation6_spill] sm:$0xff] }
 0x141   : > { %v1422_v54 = vcombine.low %v1378_v19, %v1410_v32  ;;  %v1265_v46 = vrot.slane %v1251_v45, %v4072_v48  ;;  %v1169_v2 = vrot.slane %v1155_v25, %v4038_v55  ;;  %v1185_v35 = vrot.slane %v1171_v7, %v4038_v55  ;;  %v5961_v7 = vld [vmem:[#allocation25_spill] sm:$0xff] }
 0x142   : > { %v1505_v12 = vrot.slane %v1491_v50, %v4072_v48  ;;  %v1537_v22 = vrot.slane %v1523_v57, %v4072_v48  ;;  %v1424_v38 = vcombine.low %v1385_v62, %v1417_v49  ;;  %v1443_v29 = vcombine.high %v4290_v15, %v4387_v37  ;;  %v5959_v50 = vld [vmem:[#allocation24_spill] sm:$0xff] }
 0x143   : > { %1726 = vrot.lane.b32.xlu0 %v1149_v11, %s3809_s4  ;;  %1664 = vrot.lane.b32.xlu1 %v745_v53, %s3805_s29  ;;  %v1283_v11 = vcombine.high %v1226_v17, %v1258_v20  ;;  %v1423_v53 = vcombine.high %v1378_v19, %v1410_v32  ;;  %v1284_v63 = vcombine.low %v1233_v3, %v1265_v46 }
 0x144   : > { %v1475_v16 = vcombine.high %v4427_v41, %v4494_v60  ;;  %v1556_v14 = vcombine.low %v1505_v12, %v1537_v22  ;;  %v1234_v17 = vcombine.low %v1169_v2, %v1185_v35  ;;  %v1266_v20 = vcombine.low %v1201_v1, %v1217_v5  ;;  %v5971_v5 = vld [vmem:[#allocation29_spill] sm:$0xff] }
 0x145   : > { %v1285_v18 = vcombine.high %v1233_v3, %v1265_v46  ;;  %v1441_v10 = vrot.slane %v1427_v61, %v4038_v55  ;;  %v1457_v36 = vrot.slane %v1443_v29, %v4038_v55  ;;  %v1473_v15 = vrot.slane %v1459_v0, %v4038_v55  ;;  %v5974_v29 = vld [vmem:[#allocation30_spill] sm:$0xff] }
 0x146   : > { %v1489_v37 = vrot.slane %v1475_v16, %v4038_v55  ;;  %v1242_v43 = vrot.slane %v1234_v17, %v4072_v48  ;;  %v1274_v41 = vrot.slane %v1266_v20, %v4072_v48  ;;  %v1557_v47 = vcombine.high %v1505_v12, %v1537_v22 }
 0x147   : > { %1730 = vrot.lane.b32.xlu0 %v1421_v56, %s3809_s4  ;;  %1668 = vrot.lane.b32.xlu1 %v1017_v34, %s3805_s29  ;;  %v1506_v6 = vcombine.low %v1441_v10, %v1457_v36  ;;  %v4615_v56 = vpop.permute.xlu0 %1566  ;;  %v1425_v34 = vcombine.high %v1385_v62, %v1417_v49  ;;  %v1235_v28 = vcombine.high %v1169_v2, %v1185_v35  ;;  %v5968_v2 = vld [vmem:[#allocation28_spill] sm:$0xff] }
 0x148   : > { %v1538_v60 = vcombine.low %v1473_v15, %v1489_v37  ;;  %5951 = vst [vmem:[#allocation37_spill] sm:$0xff] %v4615_v56  ;;  %v1507_v31 = vcombine.high %v1441_v10, %v1457_v36  ;;  %v1539_v30 = vcombine.high %v1473_v15, %v1489_v37  ;;  %v1281_v46 = vrot.slane %v1267_v39, %v4072_v48  ;;  %v5983_v36 = vld [vmem:[#allocation33_spill] sm:$0xff] }
 0x149   : > { %v1514_v19 = vrot.slane %v1506_v6, %v4072_v48  ;;  %v1249_v40 = vrot.slane %v1235_v28, %v4072_v48  ;;  %v5998_v28 = vld [vmem:[#allocation9_spill] sm:$0xff] }
 0x14a   : > { %v1546_v32 = vrot.slane %v1538_v60, %v4072_v48  ;;  %v1553_v25 = vrot.slane %v1539_v30, %v4072_v48  ;;  %v5989_v60 = vld [vmem:[#allocation35_spill] sm:$0xff]  ;;  %v6004_v30 = vld [vmem:[#allocation13_spill] sm:$0xff] }
 0x14b   : > { %1742 = vrot.lane.b32.xlu0 %v1150_v13, %s3810_s5  ;;  %1680 = vrot.lane.b32.xlu1 %v1282_v9, %s3806_s30  ;;  %v1286_v9 = vcombine.low %v1242_v43, %v1274_v41  ;;  %v1289_v49 = vcombine.high %v1249_v40, %v1281_v46 }
 0x14c   : > { %v1559_v3 = vcombine.high %v1514_v19, %v1546_v32 }
 0x14f   : > { %1746 = vrot.lane.b32.xlu0 %v1422_v54, %s3810_s5  ;;  %1684 = vrot.lane.b32.xlu1 %v1554_v26, %s3806_s30  ;;  %v1558_v54 = vcombine.low %v1514_v19, %v1546_v32  ;;  %v5955_v26 = vld [vmem:[#allocation5_spill] sm:$0xff] }
 0x153   : > { %1758 = vrot.lane.b32.xlu0 %v1151_v58, %s3811_s11  ;;  %1696 = vrot.lane.b32.xlu1 %v1283_v11, %s3807_s2  ;;  %v1287_v58 = vcombine.high %v1242_v43, %v1274_v41  ;;  %v5957_v11 = vld [vmem:[#allocation7_spill] sm:$0xff]  ;;  %v5986_v43 = vld [vmem:[#allocation34_spill] sm:$0xff] }
 0x157   : > { %1762 = vrot.lane.b32.xlu0 %v1423_v53, %s3811_s11  ;;  %1700 = vrot.lane.b32.xlu1 %v1555_v27, %s3807_s2  ;;  %v1288_v53 = vcombine.low %v1249_v40, %v1281_v46  ;;  %v1521_v27 = vrot.slane %v1507_v31, %v4072_v48 }
 0x159   : > { %v1560_v8 = vcombine.low %v1521_v27, %v1553_v25  ;;  %v1561_v22 = vcombine.high %v1521_v27, %v1553_v25  ;;  %v6010_v25 = vld [vmem:[#allocation17_spill] sm:$0xff] }
 0x15b   : > { %1774 = vrot.lane.b32.xlu0 %v1152_v4, %s3812_s13  ;;  %1712 = vrot.lane.b32.xlu1 %v1284_v63, %s3808_s3  ;;  %v5965_v4 = vld [vmem:[#allocation27_spill] sm:$0xff]  ;;  %v4653_v63 = vpop.permute.xlu1 %1568 }
 0x15c   : > { %5966 = vst [vmem:[#allocation5_spill] sm:$0xff] %v4653_v63 }
 0x15f   : > { %1778 = vrot.lane.b32.xlu0 %v1424_v38, %s3812_s13  ;;  %1716 = vrot.lane.b32.xlu1 %v1556_v14, %s3808_s3  ;;  %v5977_v14 = vld [vmem:[#allocation31_spill] sm:$0xff] }
 0x163   : > { %1790 = vrot.lane.b32.xlu0 %v1153_v52, %s3813_s14  ;;  %1728 = vrot.lane.b32.xlu1 %v1285_v18, %s3809_s4  ;;  %v5980_v52 = vld [vmem:[#allocation32_spill] sm:$0xff] }
 0x167   : > { %1794 = vrot.lane.b32.xlu0 %v1425_v34, %s3813_s14  ;;  %1732 = vrot.lane.b32.xlu1 %v1557_v47, %s3809_s4 }
 0x169   : > { %v4619_v13 = vpop.permute.xlu0 %1570 }
 0x16a   : > { %5952 = vst [vmem:[#allocation41_spill] sm:$0xff] %v4619_v13 }
 0x16b   : > { %1879 = vbcast.lane.b32.xlu0 %v5953_v42, 272  ;;  %1744 = vrot.lane.b32.xlu1 %v1286_v9, %s3810_s5  ;;  %v5992_v9 = vld [vmem:[#allocation36_spill] sm:$0xff] }
 0x16d   : > { %v4625_v44 = vpop.permute.xlu0 %1582 }
 0x16e   : > { %5954 = vst [vmem:[#allocation40_spill] sm:$0xff] %v4625_v44 }
 0x16f   : > { %1887 = vbcast.lane.b32.xlu0 %v5955_v26, 272  ;;  %1748 = vrot.lane.b32.xlu1 %v1558_v54, %s3810_s5 }
 0x171   : > { %v4629_v45 = vpop.permute.xlu0 %1586 }
 0x172   : > { %5956 = vst [vmem:[#allocation46_spill] sm:$0xff] %v4629_v45 }
 0x173   : > { %1895 = vbcast.lane.b32.xlu0 %v5957_v11, 272  ;;  %1760 = vrot.lane.b32.xlu1 %v1287_v58, %s3811_s11 }
 0x175   : > { %v4634_v51 = vpop.permute.xlu0 %1598 }
 0x176   : > { %5958 = vst [vmem:[#allocation42_spill] sm:$0xff] %v4634_v51 }
 0x177   : > { %1903 = vbcast.lane.b32.xlu0 %v5959_v50, 272  ;;  %1764 = vrot.lane.b32.xlu1 %v1559_v3, %s3811_s11 }
 0x179   : > { %v4639_v57 = vpop.permute.xlu0 %1602 }
 0x17a   : > { %5960 = vst [vmem:[#allocation47_spill] sm:$0xff] %v4639_v57 }
 0x17b   : > { %1911 = vbcast.lane.b32.xlu0 %v5961_v7, 272  ;;  %1776 = vrot.lane.b32.xlu1 %v1288_v53, %s3812_s13 }
 0x17d   : > { %v4645_v21 = vpop.permute.xlu0 %1614 }
 0x17e   : > { %5962 = vst [vmem:[#allocation43_spill] sm:$0xff] %v4645_v21 }
 0x17f   : > { %1919 = vbcast.lane.b32.xlu0 %v5963_v24, 272  ;;  %1780 = vrot.lane.b32.xlu1 %v1560_v8, %s3812_s13 }
 0x181   : > { %v4649_v62 = vpop.permute.xlu0 %1618 }
 0x182   : > { %5964 = vst [vmem:[#allocation6_spill] sm:$0xff] %v4649_v62 }
 0x183   : > { %1927 = vbcast.lane.b32.xlu0 %v5965_v4, 272  ;;  %1792 = vrot.lane.b32.xlu1 %v1289_v49, %s3813_s14 }
 0x185   : > { %v4655_v12 = vpop.permute.xlu0 %1630 }
 0x186   : > { %5967 = vst [vmem:[#allocation7_spill] sm:$0xff] %v4655_v12 }
 0x187   : > { %1935 = vbcast.lane.b32.xlu0 %v5968_v2, 272  ;;  %1796 = vrot.lane.b32.xlu1 %v1561_v22, %s3813_s14  ;;  %v6016_v22 = vld [vmem:[#allocation21_spill] sm:$0xff] }
 0x189   : > { %v4659_v35 = vpop.permute.xlu1 %1572  ;;  %v4661_v1 = vpop.permute.xlu0 %1634 }
 0x18a   : > { %5969 = vst [vmem:[#allocation24_spill] sm:$0xff] %v4659_v35  ;;  %5970 = vst [vmem:[#allocation25_spill] sm:$0xff] %v4661_v1 }
 0x18b   : > { %1943 = vbcast.lane.b32.xlu0 %v5971_v5, 272  ;;  %1883 = vbcast.lane.b32.xlu1 %v5953_v42, 280  ;;  %v5995_v42 = vld [vmem:[#allocation8_spill] sm:$0xff] }
 0x18d   : > { %v4665_v61 = vpop.permute.xlu1 %1584  ;;  %v4667_v38 = vpop.permute.xlu0 %1646 }
 0x18e   : > { %5972 = vst [vmem:[#allocation26_spill] sm:$0xff] %v4665_v61  ;;  %5973 = vst [vmem:[#allocation27_spill] sm:$0xff] %v4667_v38 }
 0x18f   : > { %1951 = vbcast.lane.b32.xlu0 %v5974_v29, 272  ;;  %1891 = vbcast.lane.b32.xlu1 %v5955_v26, 280 }
 0x191   : > { %v4671_v0 = vpop.permute.xlu1 %1588  ;;  %v4673_v16 = vpop.permute.xlu0 %1650 }
 0x192   : > { %5975 = vst [vmem:[#allocation28_spill] sm:$0xff] %v4671_v0  ;;  %5976 = vst [vmem:[#allocation29_spill] sm:$0xff] %v4673_v16 }
 0x193   : > { %1959 = vbcast.lane.b32.xlu0 %v5977_v14, 272  ;;  %1899 = vbcast.lane.b32.xlu1 %v5957_v11, 280  ;;  %v6001_v11 = vld [vmem:[#allocation11_spill] sm:$0xff] }
 0x195   : > { %v4677_v17 = vpop.permute.xlu1 %1600  ;;  %v4679_v20 = vpop.permute.xlu0 %1662 }
 0x196   : > { %5978 = vst [vmem:[#allocation30_spill] sm:$0xff] %v4677_v17  ;;  %5979 = vst [vmem:[#allocation31_spill] sm:$0xff] %v4679_v20 }
 0x197   : > { %1967 = vbcast.lane.b32.xlu0 %v5980_v52, 272  ;;  %1907 = vbcast.lane.b32.xlu1 %v5959_v50, 280  ;;  %v6007_v50 = vld [vmem:[#allocation15_spill] sm:$0xff] }
 0x199   : > { %v4683_v18 = vpop.permute.xlu1 %1604  ;;  %v4685_v10 = vpop.permute.xlu0 %1666 }
 0x19a   : > { %5981 = vst [vmem:[#allocation32_spill] sm:$0xff] %v4683_v18  ;;  %5982 = vst [vmem:[#allocation52_spill] sm:$0xff] %v4685_v10 }
 0x19b   : > { %1975 = vbcast.lane.b32.xlu0 %v5983_v36, 272  ;;  %1915 = vbcast.lane.b32.xlu1 %v5961_v7, 280 }
 0x19d   : > { %v4689_v15 = vpop.permute.xlu1 %1616  ;;  %v4691_v37 = vpop.permute.xlu0 %1678 }
 0x19e   : > { %5984 = vst [vmem:[#allocation33_spill] sm:$0xff] %v4689_v15  ;;  %5985 = vst [vmem:[#allocation53_spill] sm:$0xff] %v4691_v37 }
 0x19f   : > { %1983 = vbcast.lane.b32.xlu0 %v5986_v43, 272  ;;  %1923 = vbcast.lane.b32.xlu1 %v5963_v24, 280  ;;  %v6013_v24 = vld [vmem:[#allocation19_spill] sm:$0xff] }
 0x1a1   : > { %v4695_v41 = vpop.permute.xlu1 %1620  ;;  %v4697_v6 = vpop.permute.xlu0 %1682 }
 0x1a2   : > { %5987 = vst [vmem:[#allocation34_spill] sm:$0xff] %v4695_v41  ;;  %5988 = vst [vmem:[#allocation54_spill] sm:$0xff] %v4697_v6 }
 0x1a3   : > { %1991 = vbcast.lane.b32.xlu0 %v5989_v60, 272  ;;  %1931 = vbcast.lane.b32.xlu1 %v5965_v4, 280 }
 0x1a5   : > { %v4701_v34 = vpop.permute.xlu1 %1632  ;;  %v4703_v47 = vpop.permute.xlu0 %1694 }
 0x1a6   : > { %5990 = vst [vmem:[#allocation35_spill] sm:$0xff] %v4701_v34  ;;  %5991 = vst [vmem:[#allocation55_spill] sm:$0xff] %v4703_v47 }
 0x1a7   : > { %1999 = vbcast.lane.b32.xlu0 %v5992_v9, 272  ;;  %1939 = vbcast.lane.b32.xlu1 %v5968_v2, 280 }
 0x1a9   : > { %v4707_v19 = vpop.permute.xlu1 %1636  ;;  %v4709_v32 = vpop.permute.xlu0 %1698 }
 0x1aa   : > { %5993 = vst [vmem:[#allocation36_spill] sm:$0xff] %v4707_v19  ;;  %5994 = vst [vmem:[#allocation56_spill] sm:$0xff] %v4709_v32 }
 0x1ab   : > { %2007 = vbcast.lane.b32.xlu0 %v5995_v42, 272  ;;  %1947 = vbcast.lane.b32.xlu1 %v5971_v5, 280 }
 0x1ad   : > { %v4713_v54 = vpop.permute.xlu1 %1648  ;;  %v4715_v26 = vpop.permute.xlu0 %1710 }
 0x1ae   : > { %5996 = vst [vmem:[#allocation8_spill] sm:$0xff] %v4713_v54  ;;  %5997 = vst [vmem:[#allocation57_spill] sm:$0xff] %v4715_v26 }
 0x1af   : > { %2015 = vbcast.lane.b32.xlu0 %v5998_v28, 272  ;;  %1955 = vbcast.lane.b32.xlu1 %v5974_v29, 280  ;;  %v6019_v29 = vld [vmem:[#allocation23_spill] sm:$0xff] }
 0x1b1   : > { %v4719_v39 = vpop.permute.xlu1 %1652  ;;  %v4721_v58 = vpop.permute.xlu0 %1714 }
 0x1b2   : > { %5999 = vst [vmem:[#allocation9_spill] sm:$0xff] %v4719_v39  ;;  %6000 = vst [vmem:[#allocation58_spill] sm:$0xff] %v4721_v58 }
 0x1b3   : > { %1963 = vbcast.lane.b32.xlu1 %v5977_v14, 280  ;;  %2031 = vbcast.lane.b32.xlu0 %v6001_v11, 272 }
 0x1b5   : > { %v4725_v40 = vpop.permute.xlu1 %1664  ;;  %v4727_v31 = vpop.permute.xlu0 %1726 }
 0x1b6   : > { %6002 = vst [vmem:[#allocation11_spill] sm:$0xff] %v4725_v40  ;;  %6003 = vst [vmem:[#allocation59_spill] sm:$0xff] %v4727_v31 }
 0x1b7   : > { %1971 = vbcast.lane.b32.xlu1 %v5980_v52, 280  ;;  %2047 = vbcast.lane.b32.xlu0 %v6004_v30, 272 }
 0x1b9   : > { %v4731_v3 = vpop.permute.xlu1 %1668  ;;  %v4733_v46 = vpop.permute.xlu0 %1730 }
 0x1ba   : > { %6005 = vst [vmem:[#allocation13_spill] sm:$0xff] %v4731_v3  ;;  %6006 = vst [vmem:[#allocation60_spill] sm:$0xff] %v4733_v46 }
 0x1bb   : > { %1979 = vbcast.lane.b32.xlu1 %v5983_v36, 280  ;;  %2063 = vbcast.lane.b32.xlu0 %v6007_v50, 272  ;;  %v6022_v36 = vld [vmem:[#allocation10_spill] sm:$0xff] }
 0x1bd   : > { %v4737_v53 = vpop.permute.xlu1 %1680  ;;  %v4739_v27 = vpop.permute.xlu0 %1742 }
 0x1be   : > { %6008 = vst [vmem:[#allocation15_spill] sm:$0xff] %v4737_v53  ;;  %6009 = vst [vmem:[#allocation61_spill] sm:$0xff] %v4739_v27 }
 0x1bf   : > { %1987 = vbcast.lane.b32.xlu1 %v5986_v43, 280  ;;  %2079 = vbcast.lane.b32.xlu0 %v6010_v25, 272 }
 0x1c1   : > { %v4743_v7 = vpop.permute.xlu1 %1684  ;;  %v4745_v8 = vpop.permute.xlu0 %1746 }
 0x1c2   : > { %6011 = vst [vmem:[#allocation17_spill] sm:$0xff] %v4743_v7  ;;  %6012 = vst [vmem:[#allocation62_spill] sm:$0xff] %v4745_v8 }
 0x1c3   : > { %1995 = vbcast.lane.b32.xlu1 %v5989_v60, 280  ;;  %2095 = vbcast.lane.b32.xlu0 %v6013_v24, 272 }
 0x1c5   : > { %v4749_v49 = vpop.permute.xlu1 %1696  ;;  %v4751_v4 = vpop.permute.xlu0 %1758 }
 0x1c6   : > { %6014 = vst [vmem:[#allocation19_spill] sm:$0xff] %v4749_v49  ;;  %6015 = vst [vmem:[#allocation63_spill] sm:$0xff] %v4751_v4 }
 0x1c7   : > { %2003 = vbcast.lane.b32.xlu1 %v5992_v9, 280  ;;  %2111 = vbcast.lane.b32.xlu0 %v6016_v22, 272  ;;  %v6025_v9 = vld [vmem:[#allocation12_spill] sm:$0xff] }
 0x1c9   : > { %v4755_v2 = vpop.permute.xlu1 %1700  ;;  %v4757_v5 = vpop.permute.xlu0 %1762 }
 0x1ca   : > { %6017 = vst [vmem:[#allocation21_spill] sm:$0xff] %v4755_v2  ;;  %6018 = vst [vmem:[#allocation64_spill] sm:$0xff] %v4757_v5  ;;  %v6028_v2 = vld [vmem:[#allocation14_spill] sm:$0xff] }
 0x1cb   : > { %2011 = vbcast.lane.b32.xlu1 %v5995_v42, 280  ;;  %2127 = vbcast.lane.b32.xlu0 %v6019_v29, 272 }
 0x1cd   : > { %v4761_v14 = vpop.permute.xlu1 %1712  ;;  %v4763_v52 = vpop.permute.xlu0 %1774 }
 0x1ce   : > { %6020 = vst [vmem:[#allocation23_spill] sm:$0xff] %v4761_v14  ;;  %6021 = vst [vmem:[#allocation65_spill] sm:$0xff] %v4763_v52 }
 0x1cf   : > { %2023 = vbcast.lane.b32.xlu1 %v6022_v36, 272  ;;  %2027 = vbcast.lane.b32.xlu0 %v6022_v36, 280  ;;  %v6031_v36 = vld [vmem:[#allocation16_spill] sm:$0xff] }
 0x1d1   : > { %v4767_v43 = vpop.permute.xlu1 %1716  ;;  %v4769_v60 = vpop.permute.xlu0 %1778 }
 0x1d2   : > { %6023 = vst [vmem:[#allocation10_spill] sm:$0xff] %v4767_v43  ;;  %6024 = vst [vmem:[#allocation66_spill] sm:$0xff] %v4769_v60 }
 0x1d3   : > { %2039 = vbcast.lane.b32.xlu1 %v6025_v9, 272  ;;  %2043 = vbcast.lane.b32.xlu0 %v6025_v9, 280  ;;  %v6033_v9 = vld [vmem:[#allocation18_spill] sm:$0xff] }
 0x1d5   : > { %v4773_v33 = vpop.permute.xlu1 %1728  ;;  %v4775_v42 = vpop.permute.xlu0 %1790 }
 0x1d6   : > { %6026 = vst [vmem:[#allocation12_spill] sm:$0xff] %v4773_v33  ;;  %6027 = vst [vmem:[#allocation67_spill] sm:$0xff] %v4775_v42 }
 0x1d7   : > { %2055 = vbcast.lane.b32.xlu1 %v6028_v2, 272  ;;  %2059 = vbcast.lane.b32.xlu0 %v6028_v2, 280  ;;  %v6035_v2 = vld [vmem:[#allocation20_spill] sm:$0xff] }
 0x1d9   : > { %v4779_v7 = vpop.permute.xlu1 %1732  ;;  %v4781_v3 = vpop.permute.xlu0 %1794 }
 0x1da   : > { %6029 = vst [vmem:[#allocation14_spill] sm:$0xff] %v4779_v7  ;;  %6030 = vst [vmem:[#allocation68_spill] sm:$0xff] %v4781_v3 }
 0x1db   : > { %2071 = vbcast.lane.b32.xlu1 %v6031_v36, 272  ;;  %2075 = vbcast.lane.b32.xlu0 %v6031_v36, 280 }
 0x1dd   : > { %v4785_v43 = vpop.permute.xlu1 %1744  ;;  %v4787_v14 = vpop.permute.xlu0 %1879 }
 0x1de   : > { %6032 = vst [vmem:[#allocation16_spill] sm:$0xff] %v4785_v43  ;;  %v6037_v43 = vld [vmem:[#allocation22_spill] sm:$0xff] }
 0x1df   : > { %2087 = vbcast.lane.b32.xlu1 %v6033_v9, 272  ;;  %2091 = vbcast.lane.b32.xlu0 %v6033_v9, 280 }
 0x1e1   : > { %v4791_v33 = vpop.permute.xlu1 %1748  ;;  %v4793_v39 = vpop.permute.xlu0 %1887 }
 0x1e2   : > { %6034 = vst [vmem:[#allocation18_spill] sm:$0xff] %v4791_v33 }
 0x1e3   : > { %2103 = vbcast.lane.b32.xlu1 %v6035_v2, 272  ;;  %2107 = vbcast.lane.b32.xlu0 %v6035_v2, 280 }
 0x1e5   : > { %v4797_v7 = vpop.permute.xlu1 %1760  ;;  %v4799_v49 = vpop.permute.xlu0 %1895 }
 0x1e6   : > { %6036 = vst [vmem:[#allocation20_spill] sm:$0xff] %v4797_v7  ;;  %v2133_v36 = vcombine.low %v4787_v14, %v4799_v49 }
 0x1e7   : > { %2119 = vbcast.lane.b32.xlu1 %v6037_v43, 272  ;;  %2123 = vbcast.lane.b32.xlu0 %v6037_v43, 280 }
 0x1e8   : > { %v2141_v19 = vrot.slane %v2133_v36, %v4038_v55 }
 0x1e9   : > { %v4805_v9 = vpop.permute.xlu1 %1764  ;;  %v4807_v33 = vpop.permute.xlu0 %1903 }
 0x1ea   : > { %6038 = vst [vmem:[#allocation22_spill] sm:$0xff] %v4805_v9  ;;  %v2149_v2 = vcombine.low %v4793_v39, %v4807_v33 }
 0x1eb   : > { %2019 = vbcast.lane.b32.xlu1 %v5998_v28, 280 }
 0x1ec   : > { %v2157_v7 = vrot.slane %v2149_v2, %v4038_v55 }
 0x1ed   : > { %v4814_v53 = vpop.permute.xlu1 %1776  ;;  %v4816_v41 = vpop.permute.xlu0 %1911 }
 0x1ee   : > { %6039 = vst [vmem:[#allocation69_spill] sm:$0xff] %v4814_v53  ;;  %v2198_v40 = vcombine.high %v2141_v19, %v2157_v7 }
 0x1ef   : > { %2035 = vbcast.lane.b32.xlu1 %v6001_v11, 280  ;;  %v2197_v11 = vcombine.low %v2141_v19, %v2157_v7 }
 0x1f0   : > { %v4848_v19 = vrot.slane %v2198_v40, %v4072_v48 }
 0x1f1   : > { %v4819_v43 = vpop.permute.xlu1 %1780  ;;  %v4821_v9 = vpop.permute.xlu0 %1919 }
 0x1f2   : > { %6040 = vst [vmem:[#allocation70_spill] sm:$0xff] %v4819_v43 }
 0x1f3   : > { %2051 = vbcast.lane.b32.xlu1 %v6004_v30, 280 }
 0x1f5   : > { %v4824_v36 = vpop.permute.xlu1 %1792  ;;  %v4826_v18 = vpop.permute.xlu0 %1927 }
 0x1f6   : > { %6041 = vst [vmem:[#allocation71_spill] sm:$0xff] %v4824_v36  ;;  %v2165_v28 = vcombine.low %v4816_v41, %v4826_v18 }
 0x1f7   : > { %2067 = vbcast.lane.b32.xlu1 %v6007_v50, 280 }
 0x1f8   : > { %v2173_v43 = vrot.slane %v2165_v28, %v4038_v55 }
 0x1f9   : > { %v4831_v2 = vpop.permute.xlu1 %1796  ;;  %v4833_v53 = vpop.permute.xlu0 %1935 }
 0x1fa   : > { %6042 = vst [vmem:[#allocation72_spill] sm:$0xff] %v4831_v2  ;;  %v2181_v54 = vcombine.low %v4821_v9, %v4833_v53  ;;  %v4845_v2 = vrot.slane %v2197_v11, %v4072_v48 }
 0x1fb   : > { %2083 = vbcast.lane.b32.xlu1 %v6010_v25, 280 }
 0x1fc   : > { %v2189_v30 = vrot.slane %v2181_v54, %v4038_v55  ;;  %6043 = vst [vmem:[#allocation73_spill] sm:$0xff] %v4845_v2 }
 0x1fd   : > { %v4840_v36 = vpop.permute.xlu1 %1883  ;;  %v4842_v0 = vpop.permute.xlu0 %1943 }
 0x1fe   : > { %v2229_v34 = vcombine.low %v2173_v43, %v2189_v30  ;;  %v2230_v50 = vcombine.high %v2173_v43, %v2189_v30 }
 0x1ff   : > { %2099 = vbcast.lane.b32.xlu1 %v6013_v24, 280 }
 0x200   : > { %v4852_v7 = vrot.slane %v2229_v34, %v4072_v48  ;;  %v4855_v25 = vrot.slane %v2230_v50, %v4072_v48 }
 0x201   : > { %v4857_v54 = vpop.permute.xlu1 %1891  ;;  %v4859_v28 = vpop.permute.xlu0 %1951 }
 0x202   : > { %6044 = vst [vmem:[#allocation74_spill] sm:$0xff] %v4852_v7  ;;  %v2262_v43 = vcombine.high %v4845_v2, %v4852_v7 }
 0x203   : > { %2115 = vbcast.lane.b32.xlu1 %v6016_v22, 280 }
 0x204   : > { %3225 = vrot.lane.b32.xlu0 %v2262_v43, %s3799_s23 }
 0x205   : > { %v4871_v24 = vpop.permute.xlu1 %1899  ;;  %v4873_v30 = vpop.permute.xlu0 %1959 }
 0x206   : > { %v2269_v50 = vcombine.low %v4842_v0, %v4873_v30 }
 0x207   : > { %2131 = vbcast.lane.b32.xlu1 %v6019_v29, 280 }
 0x208   : > { %v2277_v34 = vrot.slane %v2269_v50, %v4038_v55 }
 0x209   : > { %v4878_v11 = vpop.permute.xlu1 %1907  ;;  %v4880_v59 = vpop.permute.xlu0 %1967 }
 0x20a   : > { %v2285_v22 = vcombine.low %v4859_v28, %v4880_v59 }
 0x20c   : > { %v2293_v43 = vrot.slane %v2285_v22, %v4038_v55 }
 0x20d   : > { %v4886_v40 = vpop.permute.xlu1 %1915  ;;  %v4888_v23 = vpop.permute.xlu0 %1975 }
 0x20e   : > { %v2334_v35 = vcombine.high %v2277_v34, %v2293_v43  ;;  %v2333_v2 = vcombine.low %v2277_v34, %v2293_v43 }
 0x210   : > { %v4911_v46 = vrot.slane %v2333_v2, %v4072_v48  ;;  %v4914_v52 = vrot.slane %v2334_v35, %v4072_v48 }
 0x211   : > { %v4890_v15 = vpop.permute.xlu1 %1923  ;;  %v4892_v17 = vpop.permute.xlu0 %1983 }
 0x212   : > { %6046 = vst [vmem:[#allocation76_spill] sm:$0xff] %v4911_v46 }
 0x215   : > { %v4894_v29 = vpop.permute.xlu1 %1931  ;;  %v4896_v3 = vpop.permute.xlu0 %1991 }
 0x216   : > { %v2301_v61 = vcombine.low %v4888_v23, %v4896_v3 }
 0x218   : > { %v2309_v60 = vrot.slane %v2301_v61, %v4038_v55 }
 0x219   : > { %v4900_v7 = vpop.permute.xlu1 %1939  ;;  %v4902_v50 = vpop.permute.xlu0 %1999 }
 0x21a   : > { %v2317_v22 = vcombine.low %v4892_v17, %v4902_v50 }
 0x21c   : > { %v2325_v63 = vrot.slane %v2317_v22, %v4038_v55 }
 0x21d   : > { %v4908_v5 = vpop.permute.xlu1 %1947 }
 0x21e   : > { %6045 = vst [vmem:[#allocation75_spill] sm:$0xff] %v4908_v5  ;;  %v2365_v8 = vcombine.low %v2309_v60, %v2325_v63  ;;  %v2366_v42 = vcombine.high %v2309_v60, %v2325_v63 }
 0x220   : > { %v4919_v4 = vrot.slane %v2365_v8, %v4072_v48  ;;  %v4922_v34 = vrot.slane %v2366_v42, %v4072_v48  ;;  %v4935_v8 = vpop.permute.xlu0 %2007 }
 0x221   : > { %v4916_v58 = vpop.permute.xlu1 %1955 }
 0x222   : > { %6047 = vst [vmem:[#allocation77_spill] sm:$0xff] %v4916_v58  ;;  %6048 = vst [vmem:[#allocation78_spill] sm:$0xff] %v4919_v4  ;;  %v2398_v61 = vcombine.high %v4911_v46, %v4919_v4 }
 0x224   : > { %3227 = vrot.lane.b32.xlu1 %v2398_v61, %s3799_s23  ;;  %v4939_v43 = vpop.permute.xlu0 %2015 }
 0x225   : > { %v4933_v2 = vpop.permute.xlu1 %1963 }
 0x226   : > { %6049 = vst [vmem:[#allocation79_spill] sm:$0xff] %v4933_v2 }
 0x228   : > { %v4945_v63 = vpop.permute.xlu0 %2031 }
 0x229   : > { %v4937_v42 = vpop.permute.xlu1 %1971  ;;  %v2421_v47 = vcombine.low %v4939_v43, %v4945_v63 }
 0x22b   : > { %v2429_v20 = vrot.slane %v2421_v47, %v4038_v55 }
 0x22c   : > { %v4949_v27 = vpop.permute.xlu0 %2047 }
 0x22d   : > { %v4941_v22 = vpop.permute.xlu1 %1979 }
 0x230   : > { %v2064_v6 = vpop.permute.xlu0 %2063 }
 0x231   : > { %v4943_v32 = vpop.permute.xlu1 %1987  ;;  %v2453_v1 = vcombine.low %v4949_v27, %v2064_v6 }
 0x233   : > { %v2461_v45 = vrot.slane %v2453_v1, %v4038_v55 }
 0x234   : > { %v4956_v26 = vpop.permute.xlu0 %2079 }
 0x235   : > { %v4947_v60 = vpop.permute.xlu1 %1995 }
 0x238   : > { %v4963_v38 = vpop.permute.xlu0 %2095 }
 0x239   : > { %v4951_v35 = vpop.permute.xlu1 %2003 }
 0x23d   : > { %v4953_v61 = vpop.permute.xlu1 %2011 }
 0x241   : > { %v2024_v31 = vpop.permute.xlu1 %2023 }
 0x242   : > { %v2405_v10 = vcombine.low %v4935_v8, %v2024_v31 }
 0x244   : > { %v2413_v37 = vrot.slane %v2405_v10, %v4038_v55  ;;  %v4975_v10 = vpop.permute.xlu0 %2111 }
 0x245   : > { %v2040_v16 = vpop.permute.xlu1 %2039 }
 0x246   : > { %v2469_v12 = vcombine.low %v2413_v37, %v2429_v20  ;;  %v2470_v46 = vcombine.high %v2413_v37, %v2429_v20  ;;  %v2557_v20 = vcombine.low %v4956_v26, %v4963_v38 }
 0x248   : > { %v4973_v56 = vrot.slane %v2469_v12, %v4072_v48  ;;  %v2166_v12 = vcombine.high %v4816_v41, %v4826_v18  ;;  %v6052_v41 = vcombine.low %v4848_v19, %v4855_v25 }
 0x249   : > { %v2056_v62 = vpop.permute.xlu1 %2055 }
 0x24a   : > { %v2437_v57 = vcombine.low %v2040_v16, %v2056_v62  ;;  %6051 = vst [vmem:[#allocation81_spill] sm:$0xff] %v4973_v56 }
 0x24c   : > { %v2445_v13 = vrot.slane %v2437_v57, %v4038_v55  ;;  %v2134_v57 = vcombine.high %v4787_v14, %v4799_v49  ;;  %v4999_v14 = vpop.permute.xlu0 %2127  ;;  %v2565_v49 = vrot.slane %v2557_v20, %v4038_v55 }
 0x24d   : > { %v4967_v21 = vpop.permute.xlu1 %2071 }
 0x24e   : > { %v2501_v51 = vcombine.low %v2445_v13, %v2461_v45  ;;  %v2502_v4 = vcombine.high %v2445_v13, %v2461_v45  ;;  %v2182_v13 = vcombine.high %v4821_v9, %v4833_v53  ;;  %v5010_v53 = vrot.slane %v2134_v57, %v4038_v55 }
 0x24f   : > { %v2454_v57 = vcombine.high %v4949_v27, %v2064_v6 }
 0x250   : > { %v4970_v44 = vrot.slane %v2501_v51, %v4072_v48  ;;  %v2150_v51 = vcombine.high %v4793_v39, %v4807_v33  ;;  %v2516_v37 = vrot.slane %v2502_v4, %v4072_v48  ;;  %v2589_v33 = vcombine.low %v4975_v10, %v4999_v14 }
 0x251   : > { %v4977_v47 = vpop.permute.xlu1 %2087  ;;  %v2484_v39 = vrot.slane %v2470_v46, %v4072_v48  ;;  %v5016_v4 = vrot.slane %v2166_v12, %v4038_v55 }
 0x252   : > { %6050 = vst [vmem:[#allocation80_spill] sm:$0xff] %v4970_v44  ;;  %v2534_v1 = vcombine.high %v4973_v56, %v4970_v44  ;;  %v2541_v5 = vcombine.low %v4967_v21, %v4977_v47  ;;  %v5013_v9 = vrot.slane %v2150_v51, %v4038_v55  ;;  %v2438_v44 = vcombine.high %v2040_v16, %v2056_v62 }
 0x253   : > { %v2597_v51 = vrot.slane %v2589_v33, %v4038_v55  ;;  %v2406_v56 = vcombine.high %v4935_v8, %v2024_v31  ;;  %v2422_v16 = vcombine.high %v4939_v43, %v4945_v63  ;;  %v5041_v31 = vrot.slane %v2454_v57, %v4038_v55 }
 0x254   : > { %3229 = vrot.lane.b32.xlu0 %v2534_v1, %s3799_s23  ;;  %v2549_v18 = vrot.slane %v2541_v5, %v4038_v55  ;;  %v5019_v1 = vrot.slane %v2182_v13, %v4038_v55  ;;  %v2213_v13 = vcombine.low %v5010_v53, %v5013_v9  ;;  %v5038_v6 = vrot.slane %v2438_v44, %v4038_v55 }
 0x255   : > { %v4992_v45 = vpop.permute.xlu1 %2103  ;;  %v5044_v8 = vrot.slane %v2406_v56, %v4038_v55  ;;  %v6055_v44 = vcombine.high %v4848_v19, %v4855_v25  ;;  %v5061_v56 = vrot.slane %v2422_v16, %v4038_v55  ;;  %v2536_v57 = vcombine.high %v2484_v39, %v2516_v37  ;;  %v5085_v16 = vpop.permute.xlu0 %2027 }
 0x256   : > { %v2605_v12 = vcombine.low %v2549_v18, %v2565_v49  ;;  %v2245_v62 = vcombine.low %v5016_v4, %v5019_v1  ;;  %v2221_v63 = vrot.slane %v2213_v13, %v4072_v48  ;;  %v2606_v19 = vcombine.high %v2549_v18, %v2565_v49 }
 0x257   : > { %v2485_v58 = vcombine.low %v5044_v8, %v5061_v56  ;;  %v2270_v13 = vcombine.high %v4842_v0, %v4873_v30  ;;  %v2318_v49 = vcombine.high %v4892_v17, %v4902_v50 }
 0x258   : > { %3241 = vrot.lane.b32.xlu0 %v6052_v41, %s3800_s24  ;;  %v2535_v41 = vcombine.low %v2484_v39, %v2516_v37  ;;  %v5047_v20 = vrot.slane %v2605_v12, %v4072_v48  ;;  %v2253_v43 = vrot.slane %v2245_v62, %v4072_v48  ;;  %v2286_v37 = vcombine.high %v4859_v28, %v4880_v59 }
 0x259   : > { %v5021_v5 = vpop.permute.xlu1 %2119  ;;  %v2302_v62 = vcombine.high %v4888_v23, %v4896_v3  ;;  %v2493_v0 = vrot.slane %v2485_v58, %v4072_v48  ;;  %v2620_v59 = vrot.slane %v2606_v19, %v4072_v48  ;;  %v6056_v28 = vcombine.low %v4914_v52, %v4922_v34 }
 0x25a   : > { %v2573_v46 = vcombine.low %v4992_v45, %v5021_v5  ;;  %6053 = vst [vmem:[#allocation82_spill] sm:$0xff] %v5047_v20  ;;  %v5095_v23 = vrot.slane %v2270_v13, %v4038_v55  ;;  %v5098_v17 = vrot.slane %v2286_v37, %v4038_v55  ;;  %v5104_v50 = vrot.slane %v2318_v49, %v4038_v55 }
 0x25b   : > { %v5101_v30 = vrot.slane %v2302_v62, %v4038_v55  ;;  %v2574_v58 = vcombine.high %v4992_v45, %v5021_v5  ;;  %v2542_v19 = vcombine.high %v4967_v21, %v4977_v47  ;;  %v2246_v45 = vcombine.high %v5016_v4, %v5019_v1 }
 0x25c   : > { %v2581_v2 = vrot.slane %v2573_v46, %v4038_v55  ;;  %3245 = vrot.lane.b32.xlu0 %v2535_v41, %s3800_s24  ;;  %v2517_v41 = vcombine.low %v5038_v6, %v5041_v31  ;;  %v2349_v5 = vcombine.low %v5095_v23, %v5098_v17  ;;  %v2266_v13 = vcombine.high %v2221_v63, %v2253_v43 }
 0x25d   : > { %v5052_v46 = vpop.permute.xlu1 %2019  ;;  %v2381_v37 = vcombine.low %v5101_v30, %v5104_v50  ;;  %v5136_v47 = vrot.slane %v2542_v19, %v4038_v55 }
 0x25e   : > { %v2637_v27 = vcombine.low %v2581_v2, %v2597_v51  ;;  %v2525_v39 = vrot.slane %v2517_v41, %v4072_v48  ;;  %v5108_v41 = vpop.permute.xlu0 %2043 }
 0x25f   : > { %v2389_v62 = vrot.slane %v2381_v37, %v4072_v48 }
 0x260   : > { %v5050_v33 = vrot.slane %v2637_v27, %v4072_v48  ;;  %3257 = vrot.lane.b32.xlu0 %v6055_v44, %s3801_s25  ;;  %v2638_v27 = vcombine.high %v2581_v2, %v2597_v51  ;;  %v2265_v51 = vcombine.low %v2221_v63, %v2253_v43  ;;  %v2537_v3 = vcombine.low %v2493_v0, %v2525_v39 }
 0x261   : > { %v5078_v2 = vpop.permute.xlu1 %2035  ;;  %v2538_v1 = vcombine.high %v2493_v0, %v2525_v39  ;;  %v2260_v63 = vrot.slane %v2246_v45, %v4072_v48  ;;  %v2357_v43 = vrot.slane %v2349_v5, %v4072_v48  ;;  %v2725_v39 = vcombine.low %v4890_v15, %v4900_v7 }
 0x262   : > { %6054 = vst [vmem:[#allocation83_spill] sm:$0xff] %v5050_v33  ;;  %v2670_v12 = vcombine.high %v5047_v20, %v5050_v33  ;;  %v2652_v18 = vrot.slane %v2638_v27, %v4072_v48  ;;  %v2590_v27 = vcombine.high %v4975_v10, %v4999_v14  ;;  %v5129_v10 = vrot.slane %v2574_v58, %v4038_v55 }
 0x263   : > { %v6057_v14 = vcombine.high %v4914_v52, %v4922_v34 }
 0x264   : > { %3261 = vrot.lane.b32.xlu0 %v2536_v57, %s3801_s25  ;;  %3231 = vrot.lane.b32.xlu1 %v2670_v12, %s3799_s23  ;;  %v2671_v44 = vcombine.low %v2620_v59, %v2652_v18  ;;  %v2214_v12 = vcombine.high %v5010_v53, %v5013_v9  ;;  %v2558_v53 = vcombine.high %v4956_v26, %v4963_v38  ;;  %v5145_v26 = vpop.permute.xlu0 %2059  ;;  %s110_s23 = scalar_lea.vmem [#allocation2], %s3664_s22 }
 0x265   : > { %v5110_v57 = vpop.permute.xlu1 %2051  ;;  %v5133_v21 = vrot.slane %v2590_v27, %v4038_v55  ;;  %v2518_v38 = vcombine.high %v5038_v6, %v5041_v31  ;;  %v2672_v34 = vcombine.high %v2620_v59, %v2652_v18  ;;  %v2486_v6 = vcombine.high %v5044_v8, %v5061_v56 }
 0x266   : > { %v2228_v9 = vrot.slane %v2214_v12, %v4072_v48  ;;  %v2401_v59 = vcombine.low %v2357_v43, %v2389_v62  ;;  %v2693_v8 = vcombine.low %v4857_v54, %v4878_v11  ;;  %v2709_v56 = vcombine.low %v4886_v40, %v4894_v29 }
 0x267   : > { %v2653_v52 = vcombine.low %v5129_v10, %v5133_v21  ;;  %v2532_v49 = vrot.slane %v2518_v38, %v4072_v48  ;;  %v2500_v58 = vrot.slane %v2486_v6, %v4072_v48  ;;  %v5182_v27 = vrot.slane %v2725_v39, %v4038_v55 }
 0x268   : > { %3273 = vrot.lane.b32.xlu0 %v2265_v51, %s3802_s26  ;;  %3243 = vrot.lane.b32.xlu1 %v6056_v28, %s3800_s24  ;;  %v5152_v51 = vrot.slane %v2558_v53, %v4038_v55  ;;  %v2267_v0 = vcombine.low %v2228_v9, %v2260_v63  ;;  %v2981_v19 = vcombine.low %v5108_v41, %v5145_v26 }
 0x269   : > { %v5147_v4 = vpop.permute.xlu1 %2067  ;;  %v2661_v18 = vrot.slane %v2653_v52, %v4072_v48  ;;  %v2539_v5 = vcombine.low %v2500_v58, %v2532_v49  ;;  %v5189_v37 = vrot.slane %v2693_v8, %v4038_v55  ;;  %v5192_v53 = vrot.slane %v2709_v56, %v4038_v55 }
 0x26a   : > { %v2621_v31 = vcombine.low %v5136_v47, %v5152_v51  ;;  %v2997_v45 = vcombine.low %v5110_v57, %v5147_v4  ;;  %v2268_v52 = vcombine.high %v2228_v9, %v2260_v63  ;;  %v2949_v6 = vcombine.low %v4953_v61, %v5085_v16 }
 0x26b   : > { %v2382_v9 = vcombine.high %v5101_v30, %v5104_v50  ;;  %v2402_v63 = vcombine.high %v2357_v43, %v2389_v62  ;;  %v2540_v30 = vcombine.high %v2500_v58, %v2532_v49  ;;  %v2654_v43 = vcombine.high %v5129_v10, %v5133_v21 }
 0x26c   : > { %3277 = vrot.lane.b32.xlu0 %v2537_v3, %s3802_s26  ;;  %3247 = vrot.lane.b32.xlu1 %v2671_v44, %s3800_s24  ;;  %v5173_v3 = vpop.permute.xlu0 %2075  ;;  %v2677_v44 = vcombine.low %v4840_v36, %v4871_v24  ;;  %v2629_v12 = vrot.slane %v2621_v31, %v4072_v48  ;;  %v5208_v31 = vrot.slane %v2981_v19, %v4038_v55  ;;  %s3598_s24 = sshll.u32 %s110_s23, 4  ;;  %s5743_s24 = int_to_ptr.vmem [resolvable:$true] %s3598_s24 }
 0x26d   : > { %v5166_v28 = vpop.permute.xlu1 %2083  ;;  %v5211_v39 = vrot.slane %v2997_v45, %v4038_v55  ;;  %v2396_v45 = vrot.slane %v2382_v9, %v4072_v48  ;;  %v2622_v49 = vcombine.high %v5136_v47, %v5152_v51  ;;  %v2861_v10 = vcombine.low %v4943_v32, %v4951_v35  ;;  %v6061_v47 = vld [vmem:[#allocation77_spill] sm:$0xff]  ;;  %v6062_v9 = vld [vmem:[#allocation79_spill] sm:$0xff] }
 0x26e   : > { %6058 = vst [vmem:[#allocation84_spill] sm:$0xff] %v5166_v28  ;;  %v2674_v62 = vcombine.high %v2629_v12, %v2661_v18  ;;  %v2668_v58 = vrot.slane %v2654_v43, %v4072_v48  ;;  %v2829_v51 = vcombine.low %v6061_v47, %v4937_v42 }
 0x270   : > { %3289 = vrot.lane.b32.xlu0 %v2266_v13, %s3803_s27  ;;  %3259 = vrot.lane.b32.xlu1 %v6057_v14, %s3801_s25  ;;  %v2673_v13 = vcombine.low %v2629_v12, %v2661_v18  ;;  %v2965_v14 = vcombine.low %v5052_v46, %v5078_v2  ;;  %v5283_v33 = vrot.slane %v2829_v51, %v4038_v55 }
 0x271   : > { %v5197_v38 = vpop.permute.xlu1 %2099 }
 0x272   : > { %v5222_v56 = vrot.slane %v2965_v14, %v4038_v55 }
 0x274   : > { %3293 = vrot.lane.b32.xlu0 %v2538_v1, %s3803_s27  ;;  %3263 = vrot.lane.b32.xlu1 %v2672_v34, %s3801_s25  ;;  %v5200_v1 = vrot.slane %v2677_v44, %v4038_v55  ;;  %v2773_v34 = vcombine.low %v5192_v53, %v5182_v27  ;;  %v5227_v44 = vrot.slane %v2949_v6, %v4038_v55  ;;  %s3672_s25 = sshll.u32 %s3850_s10, 9  ;;  %s5754_s10 = scalar_lea.sflag [#allocation3], %s108_s21 }
 0x276   : > { %v2741_v8 = vcombine.low %v5200_v1, %v5189_v37  ;;  %v2781_v50 = vrot.slane %v2773_v34, %v4072_v48  ;;  %v2742_v51 = vcombine.high %v5200_v1, %v5189_v37  ;;  %v3014_v1 = vcombine.high %v5227_v44, %v5222_v56 }
 0x278   : > { %3305 = vrot.lane.b32.xlu0 %v2267_v0, %s3804_s28  ;;  %3275 = vrot.lane.b32.xlu1 %v2401_v59, %s3802_s26  ;;  %v5213_v0 = vpop.permute.xlu0 %2091  ;;  %v2350_v59 = vcombine.high %v5095_v23, %v5098_v17  ;;  %v3045_v23 = vcombine.low %v5208_v31, %v5211_v39  ;;  %v5231_v17 = vpop.permute.xlu1 %2115  ;;  %v2749_v14 = vrot.slane %v2741_v8, %v4072_v48 }
 0x279   : > { %6059 = vst [vmem:[#allocation85_spill] sm:$0xff] %v5231_v17 }
 0x27a   : > { %v2364_v19 = vrot.slane %v2350_v59, %v4072_v48  ;;  %v3053_v21 = vrot.slane %v3045_v23, %v4072_v48  ;;  %v2805_v18 = vcombine.low %v2749_v14, %v2781_v50  ;;  %v2636_v59 = vrot.slane %v2622_v49, %v4072_v48 }
 0x27b   : > { %v5264_v23 = vrot.slane %v2861_v10, %v4038_v55  ;;  %v3101_v49 = vcombine.low %v5166_v28, %v5197_v38  ;;  %v2774_v10 = vcombine.high %v5192_v53, %v5182_v27  ;;  %v2806_v28 = vcombine.high %v2749_v14, %v2781_v50 }
 0x27c   : > { %3309 = vrot.lane.b32.xlu0 %v2539_v5, %s3804_s28  ;;  %3279 = vrot.lane.b32.xlu1 %v2673_v13, %s3802_s26  ;;  %v3013_v5 = vcombine.low %v5227_v44, %v5222_v56  ;;  %v5240_v13 = vpop.permute.xlu0 %2107  ;;  %v2403_v12 = vcombine.low %v2364_v19, %v2396_v45  ;;  %v5254_v6 = vpop.permute.xlu1 %2131  ;;  %v2676_v37 = vcombine.high %v2636_v59, %v2668_v58 }
 0x27d   : > { %6060 = vst [vmem:[#allocation86_spill] sm:$0xff] %v5254_v6  ;;  %v5298_v27 = vrot.slane %v3101_v49, %v4038_v55  ;;  %v2788_v14 = vrot.slane %v2774_v10, %v4072_v48  ;;  %v6065_v49 = vld [vmem:[#allocation78_spill] sm:$0xff] }
 0x27e   : > { %v3021_v34 = vrot.slane %v3013_v5, %v4072_v48 }
 0x280   : > { %3321 = vrot.lane.b32.xlu0 %v2268_v52, %s3805_s29  ;;  %3291 = vrot.lane.b32.xlu1 %v2402_v63, %s3803_s27  ;;  %v2845_v52 = vcombine.low %v4941_v22, %v4947_v60  ;;  %v6063_v63 = vld [vmem:[#allocation75_spill] sm:$0xff]  ;;  %v5268_v43 = vpop.permute.xlu0 %2123 }
 0x281   : > { %v2813_v8 = vcombine.low %v6063_v63, %v6062_v9  ;;  %v3117_v5 = vcombine.low %v5240_v13, %v5268_v43 }
 0x282   : > { %v5277_v25 = vrot.slane %v2845_v52, %v4038_v55 }
 0x283   : > { %v5287_v20 = vrot.slane %v2813_v8, %v4038_v55 }
 0x284   : > { %3325 = vrot.lane.b32.xlu0 %v2540_v30, %s3805_s29  ;;  %3295 = vrot.lane.b32.xlu1 %v2674_v62, %s3803_s27  ;;  %v3085_v30 = vcombine.low %v5173_v3, %v5213_v0  ;;  %v3077_v62 = vcombine.low %v3021_v34, %v3053_v21 }
 0x285   : > { %v2877_v50 = vcombine.low %v5287_v20, %v5283_v33 }
 0x286   : > { %v5292_v52 = vrot.slane %v3085_v30, %v4038_v55 }
 0x288   : > { %3337 = vrot.lane.b32.xlu0 %v2805_v18, %s3806_s30  ;;  %3307 = vrot.lane.b32.xlu1 %v2403_v12, %s3804_s28  ;;  %v3133_v18 = vcombine.low %v5231_v17, %v5254_v6  ;;  %v2675_v12 = vcombine.low %v2636_v59, %v2668_v58  ;;  %v2909_v17 = vcombine.low %v5277_v25, %v5264_v23 }
 0x289   : > { %v2404_v6 = vcombine.high %v2364_v19, %v2396_v45  ;;  %v3046_v19 = vcombine.high %v5208_v31, %v5211_v39  ;;  %v3078_v45 = vcombine.high %v3021_v34, %v3053_v21  ;;  %v3149_v8 = vcombine.low %v5292_v52, %v5298_v27 }
 0x28a   : > { %v5301_v53 = vrot.slane %v3133_v18, %v4038_v55  ;;  %v2726_v31 = vcombine.high %v4890_v15, %v4900_v7  ;;  %v2885_v39 = vrot.slane %v2877_v50, %v4072_v48  ;;  %v2694_v15 = vcombine.high %v4857_v54, %v4878_v11 }
 0x28b   : > { %v3060_v21 = vrot.slane %v3046_v19, %v4072_v48  ;;  %v3157_v56 = vrot.slane %v3149_v8, %v4072_v48  ;;  %v3028_v7 = vrot.slane %v3014_v1, %v4072_v48  ;;  %v2982_v54 = vcombine.high %v5108_v41, %v5145_v26 }
 0x28c   : > { %3341 = vrot.lane.b32.xlu0 %v3077_v62, %s3806_s30  ;;  %3311 = vrot.lane.b32.xlu1 %v2675_v12, %s3804_s28  ;;  %v5295_v62 = vrot.slane %v3117_v5, %v4038_v55  ;;  %v6064_v5 = vld [vmem:[#allocation76_spill] sm:$0xff]  ;;  %v2998_v11 = vcombine.high %v5110_v57, %v5147_v4  ;;  %v5354_v19 = vrot.slane %v2694_v15, %v4038_v55  ;;  %v6068_v15 = vld [vmem:[#allocation86_spill] sm:$0xff] }
 0x28d   : > { %v6066_v18 = vcombine.low %v6064_v5, %v6065_v49  ;;  %v3079_v10 = vcombine.low %v3028_v7, %v3060_v21  ;;  %v2950_v57 = vcombine.high %v4953_v61, %v5085_v16  ;;  %v5368_v26 = vrot.slane %v2982_v54, %v4038_v55 }
 0x28e   : > { %v3181_v30 = vcombine.low %v5295_v62, %v5301_v53  ;;  %v5371_v4 = vrot.slane %v2998_v11, %v4038_v55  ;;  %v2878_v61 = vcombine.high %v5287_v20, %v5283_v33 }
 0x28f   : > { %v5385_v16 = vrot.slane %v2950_v57, %v4038_v55 }
 0x290   : > { %3353 = vrot.lane.b32.xlu0 %v2806_v28, %s3807_s2  ;;  %3323 = vrot.lane.b32.xlu1 %v2404_v6, %s3805_s29  ;;  %v2917_v28 = vrot.slane %v2909_v17, %v4072_v48  ;;  %v2756_v6 = vrot.slane %v2742_v51, %v4072_v48  ;;  %v2710_v17 = vcombine.high %v4886_v40, %v4894_v29 }
 0x291   : > { %v3189_v44 = vrot.slane %v3181_v30, %v4072_v48  ;;  %v2678_v40 = vcombine.high %v4840_v36, %v4871_v24  ;;  %v5343_v29 = vrot.slane %v2726_v31, %v4038_v55  ;;  %v2966_v36 = vcombine.high %v5052_v46, %v5078_v2 }
 0x292   : > { %v2807_v58 = vcombine.low %v2756_v6, %v2788_v14  ;;  %v2941_v59 = vcombine.low %v2885_v39, %v2917_v28  ;;  %v5351_v51 = vrot.slane %v2710_v17, %v4038_v55  ;;  %v2808_v46 = vcombine.high %v2756_v6, %v2788_v14 }
 0x293   : > { %v3213_v50 = vcombine.low %v3157_v56, %v3189_v44  ;;  %v5360_v24 = vrot.slane %v2678_v40, %v4038_v55  ;;  %v2910_v2 = vcombine.high %v5277_v25, %v5264_v23  ;;  %v5378_v30 = vrot.slane %v2966_v36, %v4038_v55 }
 0x294   : > { %3357 = vrot.lane.b32.xlu0 %v3078_v45, %s3807_s2  ;;  %3327 = vrot.lane.b32.xlu1 %v2676_v37, %s3805_s29  ;;  %v2789_v41 = vcombine.low %v5351_v51, %v5343_v29  ;;  %v2942_v45 = vcombine.high %v2885_v39, %v2917_v28  ;;  %v3061_v25 = vcombine.low %v5368_v26, %v5371_v4  ;;  %s5749_s29 = scalar_lea.hbm %s5797_s1, %s3672_s25 }
 0x295   : > { %v2757_v8 = vcombine.low %v5360_v24, %v5354_v19  ;;  %v3080_v23 = vcombine.high %v3028_v7, %v3060_v21  ;;  %v3150_v37 = vcombine.high %v5292_v52, %v5298_v27  ;;  %v3182_v28 = vcombine.high %v5295_v62, %v5301_v53 }
 0x296   : > { %v3228_v34 = vpop.permute.xlu1 %3227  ;;  %v2797_v14 = vrot.slane %v2789_v41, %v4072_v48  ;;  %v3214_v1 = vcombine.high %v3157_v56, %v3189_v44  ;;  %v2924_v20 = vrot.slane %v2910_v2, %v4072_v48  ;;  %v3029_v33 = vcombine.low %v5385_v16, %v5378_v30  ;;  %v6071_v2 = vld [vmem:[#allocation38_spill] sm:$0xff] }
 0x297   : > { %v5337_v12 = vsel %vm1802_vm0, %v6066_v18, %v3228_v34  ;;  %v2765_v6 = vrot.slane %v2757_v8, %v4072_v48  ;;  %v2892_v31 = vrot.slane %v2878_v61, %v4072_v48  ;;  %v2862_v52 = vcombine.high %v4943_v32, %v4951_v35 }
 0x298   : > { %3369 = vrot.lane.b32.xlu0 %v2807_v58, %s3808_s3  ;;  %3339 = vrot.lane.b32.xlu1 %v2941_v59, %s3806_s30  ;;  %v3069_v27 = vrot.slane %v3061_v25, %v4072_v48  ;;  %v3164_v53 = vrot.slane %v3150_v37, %v4072_v48  ;;  %v3196_v39 = vrot.slane %v3182_v28, %v4072_v48  ;;  %v6075_v28 = vld [vmem:[#allocation42_spill] sm:$0xff] }
 0x299   : > { %v2809_v62 = vcombine.low %v2765_v6, %v2797_v14  ;;  %v2943_v21 = vcombine.low %v2892_v31, %v2924_v20  ;;  %v2846_v58 = vcombine.high %v4941_v22, %v4947_v60  ;;  %v3037_v17 = vrot.slane %v3029_v33, %v4072_v48  ;;  %v6067_v22 = vld [vmem:[#allocation84_spill] sm:$0xff] }
 0x29a   : > { %v2830_v56 = vcombine.high %v6061_v47, %v4937_v42  ;;  %v2814_v32 = vcombine.high %v6063_v63, %v6062_v9  ;;  %v5416_v35 = vrot.slane %v2862_v52, %v4038_v55  ;;  %v3086_v44 = vcombine.high %v5173_v3, %v5213_v0  ;;  %v6069_v42 = vld [vmem:[#allocation85_spill] sm:$0xff]  ;;  %v6078_v52 = vld [vmem:[#allocation48_spill] sm:$0xff] }
 0x29b   : > { %v3081_v34 = vcombine.low %v3037_v17, %v3069_v27  ;;  %v3118_v60 = vcombine.high %v5240_v13, %v5268_v43  ;;  %v3102_v59 = vcombine.high %v6067_v22, %v5197_v38  ;;  %v3134_v47 = vcombine.high %v6069_v42, %v6068_v15  ;;  %v6085_v22 = vld [vmem:[#allocation31_spill] sm:$0xff]  ;;  %v6086_v15 = vld [vmem:[#allocation6_spill] sm:$0xff] }
 0x29c   : > { %3373 = vrot.lane.b32.xlu0 %v3079_v10, %s3808_s3  ;;  %3343 = vrot.lane.b32.xlu1 %v3213_v50, %s3806_s30  ;;  %v3215_v7 = vcombine.low %v3164_v53, %v3196_v39  ;;  %v5427_v5 = vrot.slane %v2846_v58, %v4038_v55  ;;  %v2790_v9 = vcombine.high %v5351_v51, %v5343_v29  ;;  %s3733_s30 = scalar_lea.vmem %s5743_s24, 512 }
 0x29d   : > { %v5433_v3 = vrot.slane %v2830_v56, %v4038_v55  ;;  %v5437_v0 = vrot.slane %v2814_v32, %v4038_v55  ;;  %v2810_v13 = vcombine.high %v2765_v6, %v2797_v14  ;;  %v2944_v63 = vcombine.high %v2892_v31, %v2924_v20  ;;  %v6076_v20 = vld [vmem:[#allocation43_spill] sm:$0xff]  ;;  %v6077_v31 = vld [vmem:[#allocation41_spill] sm:$0xff]  ;;  %p3734_p11 = scmp.ne.s32.totalorder %s5743_s24, %s3733_s30 }
 0x29e   : > { %v2925_v38 = vcombine.low %v5427_v5, %v5416_v35  ;;  %v5442_v43 = vrot.slane %v3086_v44, %v4038_v55  ;;  %v5445_v49 = vrot.slane %v3118_v60, %v4038_v55  ;;  %v5448_v18 = vrot.slane %v3102_v59, %v4038_v55  ;;  %v6083_v32 = vld [vmem:[#allocation27_spill] sm:$0xff] }
 0x29f   : > { %v5451_v40 = vrot.slane %v3134_v47, %v4038_v55  ;;  %v2758_v29 = vcombine.high %v5360_v24, %v5354_v19  ;;  %v2893_v54 = vcombine.low %v5437_v0, %v5433_v3  ;;  %v3062_v11 = vcombine.high %v5368_v26, %v5371_v4  ;;  %v6087_v47 = vld [vmem:[#allocation53_spill] sm:$0xff]  ;;  %p3735_p12 = pnand %p3734_p11, %p3867_p5 }
 0x2a0   : > { %3385 = vrot.lane.b32.xlu0 %v2808_v46, %s3809_s4  ;;  %3355 = vrot.lane.b32.xlu1 %v2942_v45, %s3807_s2  ;;  %v3082_v10 = vcombine.high %v3037_v17, %v3069_v27  ;;  %v2804_v51 = vrot.slane %v2790_v9, %v4072_v48  ;;  %v3165_v55 = vcombine.low %v5442_v43, %v5448_v18  ;;  %v6070_v46 = vld [vmem:[#allocation37_spill] sm:$0xff]  ;;  %v6072_v45 = vld [vmem:[#allocation39_spill] sm:$0xff]  ;;  %v6082_v17 = vld [vmem:[#allocation46_spill] sm:$0xff] }
 0x2a1   : > { %v3197_v50 = vcombine.low %v5445_v49, %v5451_v40  ;;  %v3216_v19 = vcombine.high %v3164_v53, %v3196_v39  ;;  %v2933_v36 = vrot.slane %v2925_v38, %v4072_v48  ;;  %v3030_v24 = vcombine.high %v5385_v16, %v5378_v30  ;;  %v6079_v27 = vld [vmem:[#allocation49_spill] sm:$0xff]  ;;  %v6081_v39 = vld [vmem:[#allocation7_spill] sm:$0xff]  ;;  %p3736_p13 = pneg %p3735_p12 }
 0x2a2   : > { %v2772_v41 = vrot.slane %v2758_v29, %v4072_v48  ;;  %v2901_v57 = vrot.slane %v2893_v54, %v4072_v48  ;;  %v3076_v26 = vrot.slane %v3062_v11, %v4072_v48  ;;  %v6073_v8 = vcombine.low %v6071_v2, %v6072_v45  ;;  %v6088_v38 = vld [vmem:[#allocation25_spill] sm:$0xff]  ;;  %v3226_v2 = vpop.permute.xlu0 %3225 }
 0x2a3   : > { %v3173_v61 = vrot.slane %v3165_v55, %v4072_v48  ;;  %v3205_v16 = vrot.slane %v3197_v50, %v4072_v48  ;;  %v3044_v37 = vrot.slane %v3030_v24, %v4072_v48  ;;  %v2926_v54 = vcombine.high %v5427_v5, %v5416_v35  ;;  %v6091_v50 = vld [vmem:[#allocation57_spill] sm:$0xff]  ;;  %v6094_v5 = vld [vmem:[#allocation54_spill] sm:$0xff] }
 0x2a4   : > { %3389 = vrot.lane.b32.xlu0 %v3080_v23, %s3809_s4  ;;  %3359 = vrot.lane.b32.xlu1 %v3214_v1, %s3807_s2  ;;  %v2811_v4 = vcombine.low %v2772_v41, %v2804_v51  ;;  %v1803_v30 = vsel %vm1802_vm0, %v6073_v8, %v6070_v46  ;;  %v2945_v25 = vcombine.low %v2901_v57, %v2933_v36  ;;  %v6074_v23 = vld [vmem:[#allocation40_spill] sm:$0xff]  ;;  %s3817_s2 = smov [#allocation2]  }
 0x2a5   : > { %v1808_v14 = vsel %vm1807_vm1, %v1803_v30, %v6074_v23  ;;  %v3083_v6 = vcombine.low %v3044_v37, %v3076_v26  ;;  %v3217_v58 = vcombine.low %v3173_v61, %v3205_v16  ;;  %v2812_v9 = vcombine.high %v2772_v41, %v2804_v51  ;;  %v6092_v51 = vld [vmem:[#allocation52_spill] sm:$0xff]  ;;  %v6093_v41 = vld [vmem:[#allocation59_spill] sm:$0xff] }
 0x2a6   : > { %v1813_v1 = vsel %vm1812_vm2, %v1808_v14, %v6075_v28  ;;  %v2946_v11 = vcombine.high %v2901_v57, %v2933_v36  ;;  %v2894_v35 = vcombine.high %v5437_v0, %v5433_v3  ;;  %v6095_v57 = vld [vmem:[#allocation61_spill] sm:$0xff]  ;;  %v3084_v45 = vcombine.high %v3044_v37, %v3076_v26  ;;  %v6096_v0 = vld [vmem:[#allocation56_spill] sm:$0xff]  ;;  %v6097_v14 = vld [vmem:[#allocation63_spill] sm:$0xff] }
 0x2a7   : > { %v1818_v33 = vsel %vm1817_vm3, %v1813_v1, %v6076_v20  ;;  %v3166_v8 = vcombine.high %v5442_v43, %v5448_v18  ;;  %v3198_v30 = vcombine.high %v5445_v49, %v5451_v40  ;;  %v2940_v3 = vrot.slane %v2926_v54, %v4072_v48  ;;  %v6098_v1 = vld [vmem:[#allocation58_spill] sm:$0xff]  ;;  %v6099_v37 = vld [vmem:[#allocation65_spill] sm:$0xff]  ;;  %v6100_v18 = vld [vmem:[#allocation60_spill] sm:$0xff] }
 0x2a8   : > { %3401 = vrot.lane.b32.xlu0 %v2809_v62, %s3810_s5  ;;  %3371 = vrot.lane.b32.xlu1 %v2943_v21, %s3808_s3  ;;  %v6080_v62 = vcombine.low %v6078_v52, %v6079_v27  ;;  %v1823_v21 = vsel %vm1822_vm4, %v1818_v33, %v6081_v39  ;;  %v2908_v49 = vrot.slane %v2894_v35, %v4072_v48  ;;  %v6103_v52 = vld [vmem:[#allocation80_spill] sm:$0xff]  ;;  %v6105_v39 = vld [vmem:[#allocation62_spill] sm:$0xff]  ;;  %v6123_v35 = vld [vmem:[#allocation35_spill] sm:$0xff] }
 0x2a9   : > { %v1828_v44 = vsel %vm1827_vm5, %v1823_v21, %v6083_v32  ;;  %v3180_v33 = vrot.slane %v3166_v8, %v4072_v48  ;;  %v6109_v32 = vld [vmem:[#allocation45_spill] sm:$0xff] }
 0x2aa   : > { %v1805_v53 = vsel %vm1802_vm0, %v6080_v62, %v6077_v31  ;;  %v1833_v59 = vsel %vm1832_vm6, %v1828_v44, %v6085_v22  ;;  %v6102_v31 = vld [vmem:[#allocation81_spill] sm:$0xff] }
 0x2ab   : > { %v1810_v56 = vsel %vm1807_vm1, %v1805_v53, %v6082_v17  ;;  %v6104_v27 = vcombine.low %v6102_v31, %v6103_v52  ;;  %v2947_v53 = vcombine.low %v2908_v49, %v2940_v3  ;;  %v6133_v31 = vld [vmem:[#allocation23_spill] sm:$0xff] }
 0x2ac   : > { %3405 = vrot.lane.b32.xlu0 %v3081_v34, %s3810_s5  ;;  %3375 = vrot.lane.b32.xlu1 %v3215_v7, %s3808_s3  ;;  %v6084_v34 = vld [vmem:[#allocation47_spill] sm:$0xff]  ;;  %v1838_v7 = vsel %vm1837_vm7, %v1833_v59, %v6087_v47  ;;  %v6112_v59 = vld [vmem:[#allocation73_spill] sm:$0xff]  ;;  %s3737_s3 = sshll.u32 %s3817_s2, 4  ;;  %s3738_s3 = int_to_ptr.vmem [resolvable:$false] %s3737_s3 }
 0x2ad   : > { %v1815_v60 = vsel %vm1812_vm2, %v1810_v56, %v6084_v34  ;;  %v6107_v56 = vld [vmem:[#allocation5_spill] sm:$0xff]  ;;  %p3740_p0 = scmp.lt.s32.totalorder %s5743_s24, %s3738_s3 }
 0x2ae   : > { %v1820_v42 = vsel %vm1817_vm3, %v1815_v60, %v6086_v15  ;;  %v6111_v60 = vld [vmem:[#allocation66_spill] sm:$0xff] }
 0x2af   : > { %v6113_v15 = vld [vmem:[#allocation74_spill] sm:$0xff] }
 0x2b0   : > { %3417 = vrot.lane.b32.xlu0 %v2810_v13, %s3811_s11  ;;  %3387 = vrot.lane.b32.xlu1 %v2944_v63, %s3809_s4  ;;  %v1825_v13 = vsel %vm1822_vm4, %v1820_v42, %v6088_v38  ;;  %v6089_v63 = vld [vmem:[#allocation55_spill] sm:$0xff]  ;;  %v6114_v42 = vcombine.low %v6112_v59, %v6113_v15  ;;  %v6140_v59 = vld [vmem:[#allocation10_spill] sm:$0xff] }
 0x2b1   : > { %v1843_v29 = vsel %vm1842_vm8, %v1838_v7, %v6089_v63 }
 0x2b2   : > { %v3461_v47 = vsel %vm1802_vm0, %v6114_v42, %v3226_v2  ;;  %v6125_v2 = vld [vmem:[#allocation8_spill] sm:$0xff]  ;;  %v6141_v42 = vld [vmem:[#allocation69_spill] sm:$0xff] }
 0x2b4   : > { %3421 = vrot.lane.b32.xlu0 %v3082_v10, %s3811_s11  ;;  %3391 = vrot.lane.b32.xlu1 %v3216_v19, %s3809_s4  ;;  %v6090_v10 = vld [vmem:[#allocation29_spill] sm:$0xff]  ;;  %v1848_v19 = vsel %vm1847_vm9, %v1843_v29, %v6091_v50  ;;  %s3739_s4 = scalar_lea.vmem %s3738_s3, 1024 }
 0x2b5   : > { %v1830_v55 = vsel %vm1827_vm5, %v1825_v13, %v6090_v10  ;;  %v6116_v13 = vld [vmem:[#allocation68_spill] sm:$0xff]  ;;  %p3741_p1 = scmp.lt.s32.totalorder %s3739_s4, %s3733_s30 }
 0x2b6   : > { %v1835_v24 = vsel %vm1832_vm6, %v1830_v55, %v6092_v51  ;;  %v6118_v55 = vld [vmem:[#allocation33_spill] sm:$0xff]  ;;  %v6120_v51 = vld [vmem:[#allocation50_spill] sm:$0xff] }
 0x2b7   : > { %v1840_v36 = vsel %vm1837_vm7, %v1835_v24, %v6094_v5  ;;  %v6121_v24 = vld [vmem:[#allocation51_spill] sm:$0xff]  ;;  %p3742_p2 = por %p3741_p1, %p3740_p0 }
 0x2b8   : > { %3433 = vrot.lane.b32.xlu0 %v2811_v4, %s3812_s13  ;;  %3403 = vrot.lane.b32.xlu1 %v2945_v25, %s3810_s5  ;;  %v1853_v4 = vsel %vm1852_vm10, %v1848_v19, %v6093_v41  ;;  %v3218_v25 = vcombine.high %v3173_v61, %v3205_v16  ;;  %v1845_v23 = vsel %vm1842_vm8, %v1840_v36, %v6096_v0  ;;  %v6101_v61 = vld [vmem:[#allocation67_spill] sm:$0xff]  ;;  %v6119_v19 = vld [vmem:[#allocation24_spill] sm:$0xff] }
 0x2b9   : > { %v1858_v46 = vsel %vm1857_vm11, %v1853_v4, %v6095_v57  ;;  %v1850_v26 = vsel %vm1847_vm9, %v1845_v23, %v6098_v1  ;;  %v6122_v41 = vcombine.low %v6120_v51, %v6121_v24  ;;  %v6124_v57 = vld [vmem:[#allocation28_spill] sm:$0xff]  ;;  %v6127_v23 = vld [vmem:[#allocation11_spill] sm:$0xff]  ;;  %v6148_v51 = vld [vmem:[#allocation22_spill] sm:$0xff]  ;;  %p3743_p3 = pnand %p3742_p2, %p3736_p13 }
 0x2ba   : > { %v1863_v28 = vsel %vm1862_vm12, %v1858_v46, %v6097_v14  ;;  %v1855_v40 = vsel %vm1852_vm10, %v1850_v26, %v6100_v18  ;;  %v6129_v26 = vld [vmem:[#allocation15_spill] sm:$0xff] }
 0x2bb   : > { %v1868_v43 = vsel %vm1867_vm13, %v1863_v28, %v6099_v37  ;;  %v1860_v21 = vsel %vm1857_vm11, %v1855_v40, %v6105_v39  ;;  %v1806_v4 = vsel %vm1802_vm0, %v6122_v41, %v6119_v19  ;;  %v6128_v28 = vld [vmem:[#allocation34_spill] sm:$0xff]  ;;  %v6131_v40 = vld [vmem:[#allocation19_spill] sm:$0xff] }
 0x2bc   : > { %3437 = vrot.lane.b32.xlu0 %v3083_v6, %s3812_s13  ;;  %3407 = vrot.lane.b32.xlu1 %v3217_v58, %s3810_s5  ;;  %v5553_v16 = vsel %vm1872_vm14, %v1868_v43, %v6101_v61  ;;  %v3212_v6 = vrot.slane %v3198_v30, %v4072_v48  ;;  %v6106_v58 = vld [vmem:[#allocation64_spill] sm:$0xff]  ;;  %v1811_v46 = vsel %vm1807_vm1, %v1806_v4, %v6124_v57  ;;  %v6132_v61 = vld [vmem:[#allocation9_spill] sm:$0xff]  ;;  %v6149_v4 = vld [vmem:[#allocation70_spill] sm:$0xff] }
 0x2bd   : > { %v1865_v17 = vsel %vm1862_vm12, %v1860_v21, %v6106_v58  ;;  %v6108_v48 = vld [vmem:[#allocation44_spill] sm:$0xff]  ;;  %v2948_v30 = vcombine.high %v2908_v49, %v2940_v3 }
 0x2be   : > { %v6110_v44 = vcombine.low %v6108_v48, %v6109_v32  ;;  %v1870_v22 = vsel %vm1867_vm13, %v1865_v17, %v6111_v60  ;;  %v3219_v54 = vcombine.low %v3180_v33, %v3212_v6  ;;  %v6130_v43 = vld [vmem:[#allocation36_spill] sm:$0xff]  ;;  %v6136_v17 = vld [vmem:[#allocation17_spill] sm:$0xff] }
 0x2bf   : > { %v5583_v63 = vsel %vm1872_vm14, %v1870_v22, %v6116_v13  ;;  %v6135_v21 = vld [vmem:[#allocation12_spill] sm:$0xff] }
 0x2c0   : > { %3449 = vrot.lane.b32.xlu0 %v2812_v9, %s3813_s14  ;;  %3419 = vrot.lane.b32.xlu1 %v2946_v11, %s3811_s11  ;;  %v1804_v34 = vsel %vm1802_vm0, %v6110_v44, %v6107_v56  ;;  %v6115_v9 = vld [vmem:[#allocation26_spill] sm:$0xff]  ;;  %v6137_v48 = vld [vmem:[#allocation16_spill] sm:$0xff]  ;;  %v6138_v44 = vld [vmem:[#allocation21_spill] sm:$0xff] }
 0x2c1   : > { %v1809_v38 = vsel %vm1807_vm1, %v1804_v34, %v6115_v9  ;;  %v6117_v11 = vld [vmem:[#allocation30_spill] sm:$0xff]  ;;  %v6139_v60 = vld [vmem:[#allocation20_spill] sm:$0xff]  ;;  %v6143_v9 = vld [vmem:[#allocation83_spill] sm:$0xff] }
 0x2c2   : > { %v1814_v10 = vsel %vm1812_vm2, %v1809_v38, %v6117_v11  ;;  %v6150_v57 = vld [vmem:[#allocation72_spill] sm:$0xff] }
 0x2c3   : > { %v1819_v50 = vsel %vm1817_vm3, %v1814_v10, %v6118_v55  ;;  %v6146_v10 = vld [vmem:[#allocation71_spill] sm:$0xff] }
 0x2c4   : > { %3453 = vrot.lane.b32.xlu0 %v3084_v45, %s3813_s14  ;;  %3423 = vrot.lane.b32.xlu1 %v3218_v25, %s3811_s11  ;;  %v1824_v5 = vsel %vm1822_vm4, %v1819_v50, %v6123_v35  ;;  %v6126_v25 = vld [vmem:[#allocation32_spill] sm:$0xff]  ;;  %v6147_v50 = vld [vmem:[#allocation18_spill] sm:$0xff] }
 0x2c5   : > { %v1829_v45 = vsel %vm1827_vm5, %v1824_v5, %v6125_v2  ;;  %v1816_v0 = vsel %vm1812_vm2, %v1811_v46, %v6126_v25 }
 0x2c6   : > { %v3230_v20 = vpop.permute.xlu0 %3229  ;;  %v1834_v14 = vsel %vm1832_vm6, %v1829_v45, %v6127_v23  ;;  %v1821_v1 = vsel %vm1817_vm3, %v1816_v0, %v6128_v28 }
 0x2c7   : > { %v3463_v62 = vsel %vm1802_vm0, %v6104_v27, %v3230_v20  ;;  %v1839_v37 = vsel %vm1837_vm7, %v1834_v14, %v6129_v26  ;;  %v1826_v18 = vsel %vm1822_vm4, %v1821_v1, %v6130_v43 }
 0x2c8   : > { %3525 = vrot.lane.b32.xlu0 %v5553_v16, %s3814_s18  ;;  %3435 = vrot.lane.b32.xlu1 %v2947_v53, %s3812_s13  ;;  %v1844_v3 = vsel %vm1842_vm8, %v1839_v37, %v6131_v40  ;;  %v1831_v20 = vsel %vm1827_vm5, %v1826_v18, %v6132_v61  ;;  %v6134_v53 = vld [vmem:[#allocation13_spill] sm:$0xff] }
 0x2c9   : > { %v1849_v52 = vsel %vm1847_vm9, %v1844_v3, %v6133_v31  ;;  %v1836_v39 = vsel %vm1832_vm6, %v1831_v20, %v6134_v53 }
 0x2ca   : > { %v3242_v7 = vpop.permute.xlu0 %3241  ;;  %v1854_v58 = vsel %vm1852_vm10, %v1849_v52, %v6135_v21  ;;  %v1841_v56 = vsel %vm1837_vm7, %v1836_v39, %v6136_v17 }
 0x2cb   : > { %v3465_v29 = vsel %vm1807_vm1, %v3461_v47, %v3242_v7  ;;  %v1859_v32 = vsel %vm1857_vm11, %v1854_v58, %v6137_v48  ;;  %v1846_v34 = vsel %vm1842_vm8, %v1841_v56, %v6138_v44  ;;  %v6142_v7 = vld [vmem:[#allocation82_spill] sm:$0xff] }
 0x2cc   : > { %3529 = vrot.lane.b32.xlu0 %v5583_v63, %s3814_s18  ;;  %3439 = vrot.lane.b32.xlu1 %v3219_v54, %s3812_s13  ;;  %v1851_v15 = vsel %vm1847_vm9, %v1846_v34, %v6140_v59  ;;  %v6144_v38 = vcombine.low %v6142_v7, %v6143_v9  ;;  %v6145_v54 = vld [vmem:[#allocation14_spill] sm:$0xff] }
 0x2cd   : > { %v1856_v11 = vsel %vm1852_vm10, %v1851_v15, %v6145_v54 }
 0x2ce   : > { %v3246_v36 = vpop.permute.xlu0 %3245  ;;  %v1861_v19 = vsel %vm1857_vm11, %v1856_v11, %v6147_v50 }
 0x2cf   : > { %v3467_v8 = vsel %vm1807_vm1, %v3463_v62, %v3246_v36  ;;  %v3220_v62 = vcombine.high %v3180_v33, %v3212_v6  ;;  %v1864_v33 = vsel %vm1862_vm12, %v1859_v32, %v6139_v60  ;;  %v1866_v24 = vsel %vm1862_vm12, %v1861_v19, %v6148_v51 }
 0x2d0   : > { %3451 = vrot.lane.b32.xlu1 %v2948_v30, %s3813_s14  ;;  %v1869_v47 = vsel %vm1867_vm13, %v1864_v33, %v6141_v42  ;;  %v1871_v35 = vsel %vm1867_vm13, %v1866_v24, %v6149_v4 }
 0x2d1   : > { %v5649_v55 = vsel %vm1872_vm14, %v1869_v47, %v6146_v10  ;;  %v5662_v46 = vsel %vm1872_vm14, %v1871_v35, %v6150_v57 }
 0x2d2   : > { %v3258_v49 = vpop.permute.xlu0 %3257 }
 0x2d3   : > { %v3469_v27 = vsel %vm1812_vm2, %v3465_v29, %v3258_v49 }
 0x2d4   : > { %3455 = vrot.lane.b32.xlu1 %v3220_v62, %s3813_s14 }
 0x2d6   : > { %v3232_v6 = vpop.permute.xlu1 %3231  ;;  %v3262_v22 = vpop.permute.xlu0 %3261 }
 0x2d7   : > { %v3464_v13 = vsel %vm1802_vm0, %v6144_v38, %v3232_v6  ;;  %v3471_v29 = vsel %vm1812_vm2, %v3467_v8, %v3262_v22  ;;  %vm3570_vm0 = vcmask 523264  }
 0x2d8   : > { %3527 = vrot.lane.b32.xlu1 %v5649_v55, %s3814_s18 }
 0x2da   : > { %v3274_v41 = vpop.permute.xlu0 %3273  ;;  %v3244_v5 = vpop.permute.xlu1 %3243 }
 0x2db   : > { %v3473_v36 = vsel %vm1817_vm3, %v3469_v27, %v3274_v41  ;;  %v3466_v2 = vsel %vm1807_vm1, %v5337_v12, %v3244_v5 }
 0x2dc   : > { %3531 = vrot.lane.b32.xlu1 %v5662_v46, %s3814_s18 }
 0x2de   : > { %v3278_v45 = vpop.permute.xlu0 %3277  ;;  %v3248_v8 = vpop.permute.xlu1 %3247 }
 0x2df   : > { %v3475_v30 = vsel %vm1817_vm3, %v3471_v29, %v3278_v45  ;;  %v3468_v25 = vsel %vm1807_vm1, %v3464_v13, %v3248_v8  ;;  %vm3575_vm1 = vcmask 785408  }
 0x2e2   : > { %v3290_v0 = vpop.permute.xlu0 %3289  ;;  %v3260_v23 = vpop.permute.xlu1 %3259 }
 0x2e3   : > { %v3477_v14 = vsel %vm1822_vm4, %v3473_v36, %v3290_v0  ;;  %v3470_v28 = vsel %vm1812_vm2, %v3466_v2, %v3260_v23 }
 0x2e6   : > { %v3294_v1 = vpop.permute.xlu0 %3293  ;;  %v3264_v26 = vpop.permute.xlu1 %3263 }
 0x2e7   : > { %v3479_v37 = vsel %vm1822_vm4, %v3475_v30, %v3294_v1  ;;  %v3472_v12 = vsel %vm1812_vm2, %v3468_v25, %v3264_v26 }
 0x2ea   : > { %v3306_v43 = vpop.permute.xlu0 %3305  ;;  %v3276_v18 = vpop.permute.xlu1 %3275 }
 0x2eb   : > { %v3474_v40 = vsel %vm1817_vm3, %v3470_v28, %v3276_v18  ;;  %v3481_v10 = vsel %vm1827_vm5, %v3477_v14, %v3306_v43 }
 0x2ee   : > { %v3310_v3 = vpop.permute.xlu0 %3309  ;;  %v3280_v49 = vpop.permute.xlu1 %3279 }
 0x2ef   : > { %v3476_v61 = vsel %vm1817_vm3, %v3472_v12, %v3280_v49  ;;  %v3483_v4 = vsel %vm1827_vm5, %v3479_v37, %v3310_v3 }
 0x2f2   : > { %v3322_v20 = vpop.permute.xlu0 %3321  ;;  %v3292_v31 = vpop.permute.xlu1 %3291 }
 0x2f3   : > { %v3478_v52 = vsel %vm1822_vm4, %v3474_v40, %v3292_v31  ;;  %v3485_v19 = vsel %vm1832_vm6, %v3481_v10, %v3322_v20 }
 0x2f6   : > { %v3326_v27 = vpop.permute.xlu0 %3325  ;;  %v3296_v62 = vpop.permute.xlu1 %3295 }
 0x2f7   : > { %v5678_v53 = vsel %vm1822_vm4, %v3476_v61, %v3296_v62  ;;  %v3487_v36 = vsel %vm1832_vm6, %v3483_v4, %v3326_v27 }
 0x2fa   : > { %v3338_v39 = vpop.permute.xlu0 %3337  ;;  %v3308_v21 = vpop.permute.xlu1 %3307 }
 0x2fb   : > { %v3489_v24 = vsel %vm1837_vm7, %v3485_v19, %v3338_v39  ;;  %v3482_v49 = vsel %vm1827_vm5, %v3478_v52, %v3308_v21 }
 0x2fe   : > { %v3342_v58 = vpop.permute.xlu0 %3341  ;;  %v3312_v17 = vpop.permute.xlu1 %3311 }
 0x2ff   : > { %v3491_v45 = vsel %vm1837_vm7, %v3487_v36, %v3342_v58  ;;  %v3484_v62 = vsel %vm1827_vm5, %v5678_v53, %v3312_v17 }
 0x302   : > { %v3354_v56 = vpop.permute.xlu0 %3353  ;;  %v3324_v48 = vpop.permute.xlu1 %3323 }
 0x303   : > { %v3493_v41 = vsel %vm1842_vm8, %v3489_v24, %v3354_v56  ;;  %v3486_v20 = vsel %vm1832_vm6, %v3482_v49, %v3324_v48 }
 0x306   : > { %v3358_v32 = vpop.permute.xlu0 %3357  ;;  %v3328_v44 = vpop.permute.xlu1 %3327 }
 0x307   : > { %v3495_v30 = vsel %vm1842_vm8, %v3491_v45, %v3358_v32  ;;  %v3488_v56 = vsel %vm1832_vm6, %v3484_v62, %v3328_v44 }
 0x30a   : > { %v3370_v34 = vpop.permute.xlu0 %3369  ;;  %v3340_v60 = vpop.permute.xlu1 %3339 }
 0x30b   : > { %v3497_v35 = vsel %vm1847_vm9, %v3493_v41, %v3370_v34  ;;  %v3490_v31 = vsel %vm1837_vm7, %v3486_v20, %v3340_v60 }
 0x30e   : > { %v3374_v33 = vpop.permute.xlu0 %3373  ;;  %v3344_v6 = vpop.permute.xlu1 %3343 }
 0x30f   : > { %v3499_v0 = vsel %vm1847_vm9, %v3495_v30, %v3374_v33  ;;  %v3492_v52 = vsel %vm1837_vm7, %v3488_v56, %v3344_v6 }
 0x312   : > { %v3386_v22 = vpop.permute.xlu0 %3385  ;;  %v3356_v59 = vpop.permute.xlu1 %3355 }
 0x313   : > { %v3501_v57 = vsel %vm1852_vm10, %v3497_v35, %v3386_v22  ;;  %v3494_v27 = vsel %vm1842_vm8, %v3490_v31, %v3356_v59 }
 0x316   : > { %v3390_v15 = vpop.permute.xlu0 %3389  ;;  %v3360_v42 = vpop.permute.xlu1 %3359 }
 0x317   : > { %v3503_v28 = vsel %vm1852_vm10, %v3499_v0, %v3390_v15  ;;  %v3496_v48 = vsel %vm1842_vm8, %v3492_v52, %v3360_v42 }
 0x31a   : > { %v3402_v47 = vpop.permute.xlu0 %3401  ;;  %v3372_v7 = vpop.permute.xlu1 %3371 }
 0x31b   : > { %v3505_v8 = vsel %vm1857_vm11, %v3501_v57, %v3402_v47  ;;  %v3498_v39 = vsel %vm1847_vm9, %v3494_v27, %v3372_v7 }
 0x31e   : > { %v3406_v9 = vpop.permute.xlu0 %3405  ;;  %v3376_v38 = vpop.permute.xlu1 %3375 }
 0x31f   : > { %v3507_v37 = vsel %vm1857_vm11, %v3503_v28, %v3406_v9  ;;  %v3500_v60 = vsel %vm1847_vm9, %v3496_v48, %v3376_v38 }
 0x322   : > { %v3418_v13 = vpop.permute.xlu0 %3417  ;;  %v3388_v29 = vpop.permute.xlu1 %3387 }
 0x323   : > { %v3509_v25 = vsel %vm1862_vm12, %v3505_v8, %v3418_v13  ;;  %v3502_v32 = vsel %vm1852_vm10, %v3498_v39, %v3388_v29 }
 0x326   : > { %v3422_v54 = vpop.permute.xlu0 %3421  ;;  %v3392_v11 = vpop.permute.xlu1 %3391 }
 0x327   : > { %v3511_v12 = vsel %vm1862_vm12, %v3507_v37, %v3422_v54  ;;  %v3504_v33 = vsel %vm1852_vm10, %v3500_v60, %v3392_v11 }
 0x32a   : > { %v3434_v50 = vpop.permute.xlu0 %3433  ;;  %v3404_v51 = vpop.permute.xlu1 %3403 }
 0x32b   : > { %v3513_v23 = vsel %vm1867_vm13, %v3509_v25, %v3434_v50  ;;  %v3506_v21 = vsel %vm1857_vm11, %v3502_v32, %v3404_v51 }
 0x32e   : > { %v3438_v5 = vpop.permute.xlu0 %3437  ;;  %v3408_v2 = vpop.permute.xlu1 %3407 }
 0x32f   : > { %v3515_v43 = vsel %vm1867_vm13, %v3511_v12, %v3438_v5  ;;  %v3508_v22 = vsel %vm1857_vm11, %v3504_v33, %v3408_v2 }
 0x332   : > { %v3450_v14 = vpop.permute.xlu0 %3449  ;;  %v3420_v1 = vpop.permute.xlu1 %3419 }
 0x333   : > { %v3517_v26 = vsel %vm1872_vm14, %v3513_v23, %v3450_v14  ;;  %v3510_v34 = vsel %vm1862_vm12, %v3506_v21, %v3420_v1 }
 0x334   : > { %3541 = vrot.lane.b32.xlu0 %v3517_v26, %s3815_s19 }
 0x336   : > { %v3454_v18 = vpop.permute.xlu0 %3453  ;;  %v3424_v40 = vpop.permute.xlu1 %3423 }
 0x337   : > { %v3519_v3 = vsel %vm1872_vm14, %v3515_v43, %v3454_v18  ;;  %v3512_v6 = vsel %vm1862_vm12, %v3508_v22, %v3424_v40 }
 0x338   : > { %3545 = vrot.lane.b32.xlu0 %v3519_v3, %s3815_s19 }
 0x33a   : > { %v3436_v61 = vpop.permute.xlu1 %3435  ;;  %v3526_v47 = vpop.permute.xlu0 %3525 }
 0x33b   : > { %v3514_v53 = vsel %vm1867_vm13, %v3510_v34, %v3436_v61  ;;  %v3566_v13 = vsel %vm3565_vm15, %v5553_v16, %v3526_v47 }
 0x33c   : > { %3553 = vrot.lane.b32.xlu0 %v3517_v26, %s3816_s20 }
 0x33e   : > { %v3440_v58 = vpop.permute.xlu1 %3439  ;;  %v3530_v7 = vpop.permute.xlu0 %3529 }
 0x33f   : > { %v3516_v59 = vsel %vm1867_vm13, %v3512_v6, %v3440_v58  ;;  %v3568_v50 = vsel %vm3565_vm15, %v5583_v63, %v3530_v7 }
 0x340   : > { %3557 = vrot.lane.b32.xlu0 %v3519_v3, %s3816_s20 }
 0x342   : > { %v3452_v17 = vpop.permute.xlu1 %3451 }
 0x343   : > { %v3518_v44 = vsel %vm1872_vm14, %v3514_v53, %v3452_v17 }
 0x344   : > { %3543 = vrot.lane.b32.xlu1 %v3518_v44, %s3815_s19 }
 0x346   : > { %v3456_v15 = vpop.permute.xlu1 %3455 }
 0x347   : > { %v3520_v42 = vsel %vm1872_vm14, %v3516_v59, %v3456_v15 }
 0x348   : > { %3547 = vrot.lane.b32.xlu1 %v3520_v42, %s3815_s19 }
 0x34a   : > { %v3528_v29 = vpop.permute.xlu1 %3527 }
 0x34b   : > { %v3567_v35 = vsel %vm3565_vm15, %v5649_v55, %v3528_v29 }
 0x34c   : > { %3555 = vrot.lane.b32.xlu1 %v3518_v44, %s3816_s20 }
 0x34e   : > { %v3532_v24 = vpop.permute.xlu1 %3531 }
 0x34f   : > { %v3569_v57 = vsel %vm3565_vm15, %v5662_v46, %v3532_v24 }
 0x350   : > { %3559 = vrot.lane.b32.xlu1 %v3520_v42, %s3816_s20 }
 0x3a6   : > { %v3542_v9 = vpop.permute.xlu0 %3541 }
 0x3a7   : > { %v3571_v54 = vsel %vm3570_vm0, %v3566_v13, %v3542_v9 }
 0x3aa   : > { %v3546_v38 = vpop.permute.xlu0 %3545 }
 0x3ab   : > { %v3573_v19 = vsel %vm3570_vm0, %v3568_v50, %v3546_v38 }
 0x3ae   : > { %v3554_v11 = vpop.permute.xlu0 %3553 }
 0x3af   : > { %v3576_v10 = vsel %vm3575_vm1, %v3571_v54, %v3554_v11 }
 0x3b0   : > { %3580 = vst [vmem:[%s110_s23] sm:$0xff] %v3576_v10 }
 0x3b2   : > { %v3558_v51 = vpop.permute.xlu0 %3557 }
 0x3b3   : > { %v3578_v41 = vsel %vm3575_vm1, %v3573_v19, %v3558_v51 }
 0x3b4   : > { %3582 = vst [vmem:[%s110_s23 + $0x10] sm:$0xff] %v3578_v41 }
 0x3b6   : > { %v3544_v16 = vpop.permute.xlu1 %3543 }
 0x3b7   : > { %v3572_v5 = vsel %vm3570_vm0, %v3567_v35, %v3544_v16 }
 0x3ba   : > { %v3548_v4 = vpop.permute.xlu1 %3547 }
 0x3bb   : > { %v3574_v2 = vsel %vm3570_vm0, %v3569_v57, %v3548_v4 }
 0x3be   : > { %v3556_v36 = vpop.permute.xlu1 %3555 }
 0x3bf   : > { %v3577_v63 = vsel %vm3575_vm1, %v3572_v5, %v3556_v36 }
 0x3c0   : > { %3581 = vst [vmem:[%s110_s23 + $0x8] sm:$0xff] %v3577_v63 }
 0x3c2   : > { %v3560_v55 = vpop.permute.xlu1 %3559 }
 0x3c3   : > { %v3579_v45 = vsel %vm3575_vm1, %v3574_v2, %v3560_v55 }
 0x3c4   : > { %3583 = vst [vmem:[%s110_s23 + $0x18] sm:$0xff] %v3579_v45 }
 0x3c5   : > { %3746 = shalt.err (!%p3743_p3)
}
 0x3c6   : > { %s3747_s5 = scalar_lea.hbm %s5749_s29, 512  ;;  %s3751_s14 = scalar_lea.hbm %s5797_s1, 1024 }
 0x3c7   : > { %p3748_p4 = scmp.ne.s32.totalorder %s5749_s29, %s3747_s5  ;;  %p3752_p9 = scmp.lt.u32.totalorder %s5749_s29, %s5797_s1 }
 0x3c8   : > { %p3753_p10 = scmp.lt.u32.totalorder %s3751_s14, %s3747_s5  ;;  %p3755_p12 = scmp.lt.u32.totalorder %s3747_s5, %s5749_s29 }
 0x3c9   : > { %p3749_p7 = pnand %p3748_p4, %p3867_p5 }
 0x3ca   : > { %p3754_p11 = por %p3753_p10, %p3752_p9 }
 0x3cb   : > { %p3750_p8 = pneg %p3749_p7 }
 0x3cc   : > { %p3756_p13 = por %p3755_p12, %p3754_p11 }
 0x3ce   : > { %p3757_p0 = pnand %p3756_p13, %p3750_p8 }
 0x3d0   : > { %3760 = shalt.err (!%p3757_p0)
}
 0x3d1   : > { %s3818_s20 = smov 128  }
 0x3d2   : > { %3673 = dma.vmem_to_hbm [thread:$0]  (%p3867_p5), %s5743_s24, 512, %s5749_s29, %s5754_s10, %s3818_s20, %s3818_s20, %s3802_s26  }
 0x3d3 PF: > { %p3679_p1 = scmp.ge.s32.totalorder %s3795_s9, 2  ;;  %s3613_s21 = sand.u32 1, %s3783_s6  }
 0x3d4   : > { %s3614_s22 = scalar_lea.sflag [#allocation3], %s3613_s21 }
 0x3d5   : > { %p3676_p2 = pnand %p3679_p1, %p3871_p6 }
 0x3d7   : > { %3778 = dma.done.wait (!%p3676_p2), %s3614_s22, 512  }
 0x3d8   : > { %3780 = vsyncadd (!%p3676_p2), %s3614_s22, 4294966784  ;;  %p11_p3 = scmp.ge.s32.totalorder %s3854_s12, 4   ;;  %s6151_s6 = smov %s3787_s7 }
 0x3d9   : > { %s6152_s7 = smov %s3791_s8  ;;  %s6153_s8 = smov %s3865_s15 }
 0x3da   : > { %s6154_s9 = smov %s3854_s12  ;;  %13 = sbr.rel (!%p11_p3) target bundleno = 3 (0x3), region = 59 }
 0x3e1   :  { %3619 = vsyncpa [#allocation3], 1 }
 0x3e2   :  { %3621 = vsyncpa [#allocation3 + $0x1], 1 }

</bundles_post_ra>
